<compile_context>
chip_gen: v5e
topology: v5e:2x2
jax: 0.10.0
libtpu: 0.0.40
codegen_flags: <defaults>
</compile_context>

<pallas_src>
import math

import jax
import jax.numpy as jnp
import numpy as np
from jax.experimental import pallas as pl
from jax.experimental.pallas import tpu as pltpu


def _pos_embed_kernel(sy_ref, sx_ref, o_ref):
    """Pure broadcast-store of one (c_out, th, tw) output tile.

    sy_ref: (npf, th, 1)  per-row sin table for this row tile.
    sx_ref: (npf, 1, tw)  per-column sin table for this column tile.
    o_ref:  (2*npf, th, tw) output tile (channels, rows on sublanes, cols on lanes).
    """
    npf = sy_ref.shape[0]
    _, th, tw = o_ref.shape
    # y-channels: broadcast each row value across the lane (w) axis.
    o_ref[0:npf, :, :] = jnp.broadcast_to(sy_ref[...], (npf, th, tw)).astype(o_ref.dtype)
    # x-channels: broadcast the column row across the sublane (h) axis.
    o_ref[npf:2 * npf, :, :] = jnp.broadcast_to(sx_ref[...], (npf, th, tw)).astype(o_ref.dtype)


# ~4 MiB per output block: double-buffered plus the tiny table inputs stays well
# inside the 32 MiB VMEM limit we request (and v7x's 64 MiB physical VMEM).
_BLOCK_BYTES = 4 * 1024 * 1024


def _choose_tiles(c_out, h, w, itemsize):
    # Lane (w) tile: full width if an 8-row slab fits the budget, else a 128-multiple.
    if w <= 128 or c_out * 8 * w * itemsize <= _BLOCK_BYTES:
        tw = w
    else:
        tw = max(128, (_BLOCK_BYTES // (c_out * 8 * itemsize)) // 128 * 128)
    # Sublane (h) tile: multiple of 8 within the budget; force >= 2 row tiles whenever
    # h > 8 so the "parallel" grid axes can shard across v7x's two TensorCores.
    if h <= 8:
        th = h
    else:
        th_budget = max(8, (_BLOCK_BYTES // (c_out * tw * itemsize)) // 8 * 8)
        th_half = max(8, (((h + 1) // 2) + 7) // 8 * 8)
        th = min(th_budget, th_half)
    return th, tw


def position_embedding_sine_slab(h, w, num_pos_feats=64, temperature=10000,
                                 normalize=True, scale=None, dtype=jnp.float32):
    """Computes the (2*num_pos_feats, h, w) embedding slab (batch-independent)."""
    if scale is not None and normalize is False:
        raise ValueError('normalize should be True if scale is passed')
    if scale is None:
        scale = 2 * math.pi

    npf = int(num_pos_feats)
    c_out = 2 * npf
    eps = 1e-06
    y_scale = float(scale) / (float(h) + eps) if normalize else 1.0
    x_scale = float(scale) / (float(w) + eps) if normalize else 1.0

    # ---- Tiny separable tables, baked at trace time in float64 (host numpy). ----
    # dim_t[k] = temperature ** (2*(k//2)/npf); cos(t) folded as sin(t + pi/2).
    k = np.arange(npf, dtype=np.float64)
    inv_dim_t = np.power(float(temperature), -(2.0 * np.floor(k / 2.0)) / float(npf))
    half_phase = (k % 2) * (math.pi / 2.0)                      # even->sin, odd->cos
    y_vals = np.arange(1, h + 1, dtype=np.float64) * y_scale    # (h,)
    x_vals = np.arange(1, w + 1, dtype=np.float64) * x_scale    # (w,)
    sin_y = np.sin(inv_dim_t[:, None] * y_vals[None, :] + half_phase[:, None])  # (npf, h)
    sin_x = np.sin(inv_dim_t[:, None] * x_vals[None, :] + half_phase[:, None])  # (npf, w)

    sin_y = jnp.asarray(sin_y.reshape(npf, h, 1), dtype=jnp.float32)
    sin_x = jnp.asarray(sin_x.reshape(npf, 1, w), dtype=jnp.float32)

    itemsize = np.dtype(dtype).itemsize
    th, tw = _choose_tiles(c_out, h, w, itemsize)
    grid = (pl.cdiv(h, th), pl.cdiv(w, tw))

    return pl.pallas_call(
        _pos_embed_kernel,
        out_shape=jax.ShapeDtypeStruct((c_out, h, w), dtype),
        grid=grid,
        in_specs=[
            pl.BlockSpec((npf, th, 1), lambda i, j: (0, i, 0)),   # row table
            pl.BlockSpec((npf, 1, tw), lambda i, j: (0, 0, j)),   # column table
        ],
        out_specs=pl.BlockSpec((c_out, th, tw), lambda i, j: (0, i, j)),
        compiler_params=pltpu.CompilerParams(
            dimension_semantics=("parallel", "parallel"),
            vmem_limit_bytes=32 * 1024 * 1024),
    )(sin_y, sin_x)


def position_embedding_sine(x, num_pos_feats=64, temperature=10000,
                            normalize=True, scale=None, dtype=jnp.float32):
    """JAX/Pallas equivalent of PositionEmbeddingSine.forward.

    Args:
      x: array of shape (b, c, h, w) in NCHW; only its shape is used.
    Returns:
      array of shape (b, 2*num_pos_feats, h, w), dtype `dtype` (default float32).
    """
    b = x.shape[0]
    h, w = x.shape[2], x.shape[3]
    slab = position_embedding_sine_slab(
        h, w, num_pos_feats=num_pos_feats, temperature=temperature,
        normalize=normalize, scale=scale, dtype=dtype)
    # The embedding is identical for every batch element; the kernel wrote it once.
    # Under jit this broadcast fuses into the consumer; callers that only add the
    # embedding to features should use position_embedding_sine_slab (and/or bf16)
    # to avoid materializing b copies.
    return jnp.broadcast_to(slab[None], (b, slab.shape[0], h, w))


def _reference_jax(x, num_pos_feats=64, temperature=10000, normalize=True, scale=None):
    """Pure-JAX port of the PyTorch forward, for a correctness check."""
    if scale is None:
        scale = 2 * math.pi
    b, _, h, w = x.shape
    mask = jnp.ones((b, h, w), jnp.float32)
    y_embed = jnp.cumsum(mask, axis=1)
    x_embed = jnp.cumsum(mask, axis=2)
    if normalize:
        eps = 1e-06
        y_embed = y_embed / (y_embed[:, -1:, :] + eps) * scale
        x_embed = x_embed / (x_embed[:, :, -1:] + eps) * scale
    dim_t = jnp.arange(num_pos_feats, dtype=jnp.float32)
    dim_t = temperature ** (2 * jnp.floor(dim_t / 2) / num_pos_feats)
    pos_x = x_embed[:, :, :, None] / dim_t
    pos_y = y_embed[:, :, :, None] / dim_t
    pos_x = jnp.stack((jnp.sin(pos_x[:, :, :, 0::2]),
                       jnp.cos(pos_x[:, :, :, 1::2])), axis=4).reshape(b, h, w, -1)
    pos_y = jnp.stack((jnp.sin(pos_y[:, :, :, 0::2]),
                       jnp.cos(pos_y[:, :, :, 1::2])), axis=4).reshape(b, h, w, -1)
    pos = jnp.concatenate((pos_y, pos_x), axis=3)
    return jnp.transpose(pos, (0, 3, 1, 2))


if __name__ == "__main__":
    key = jax.random.PRNGKey(0)
    b, c, h, w = 2, 4, 16, 16
    x = jax.random.normal(key, (b, c, h, w), dtype=jnp.float32)

    pos = position_embedding_sine(x, num_pos_feats=64, temperature=10000,
                                  normalize=True)
    pos = jax.block_until_ready(pos)

    ref = jax.block_until_ready(_reference_jax(x, num_pos_feats=64))
    assert pos.shape == (b, 128, h, w), pos.shape
    np.testing.assert_allclose(np.asarray(pos), np.asarray(ref),
                               rtol=1e-5, atol=5e-5)

    print("KERNEL_OK")
</pallas_src>

<mosaic_0001>
module attributes {stable_mosaic.version = 11 : i64} {
  func.func @_pos_embed_kernel(%arg0: i32, %arg1: i32, %arg2: memref<64x8x1xf32, #tpu.memory_space<vmem>>, %arg3: memref<64x1x16xf32, #tpu.memory_space<vmem>>, %arg4: memref<128x8x16xf32, #tpu.memory_space<vmem>>) attributes {dimension_semantics = [#tpu.dimension_semantics<parallel>, #tpu.dimension_semantics<parallel>], iteration_bounds = array<i64: 2, 1>, scalar_prefetch = 0 : i64, scratch_operands = 0 : i64, tpu.core_type = #tpu.core_type<tc>, window_params = [{transform_indices = @transform_0, window_bounds = array<i64: 64, 8, 1>}, {transform_indices = @transform_1, window_bounds = array<i64: 64, 1, 16>}, {transform_indices = @transform_2, window_bounds = array<i64: 128, 8, 16>}]} {
    %c0 = arith.constant 0 : index
    %c0_0 = arith.constant 0 : index
    %c0_1 = arith.constant 0 : index
    %0 = vector.load %arg2[%c0, %c0_0, %c0_1] : memref<64x8x1xf32, #tpu.memory_space<vmem>>, vector<64x8x1xf32>
    %1 = vector.shape_cast %0 : vector<64x8x1xf32> to vector<64x8x1xf32>
    %2 = vector.broadcast %1 : vector<64x8x1xf32> to vector<64x8x16xf32>
    %c0_2 = arith.constant 0 : index
    %c0_3 = arith.constant 0 : index
    %c0_4 = arith.constant 0 : index
    %3 = vector.load %arg4[%c0_2, %c0_3, %c0_4] : memref<128x8x16xf32, #tpu.memory_space<vmem>>, vector<64x8x16xf32>
    tpu.vector_store %arg4[%c0_2, %c0_3, %c0_4], %2 {strides = array<i32>} : memref<128x8x16xf32, #tpu.memory_space<vmem>>, vector<64x8x16xf32>,
    %c0_5 = arith.constant 0 : index
    %c0_6 = arith.constant 0 : index
    %c0_7 = arith.constant 0 : index
    %4 = vector.load %arg3[%c0_5, %c0_6, %c0_7] : memref<64x1x16xf32, #tpu.memory_space<vmem>>, vector<64x1x16xf32>
    %5 = vector.shape_cast %4 : vector<64x1x16xf32> to vector<64x1x16xf32>
    %6 = vector.broadcast %5 : vector<64x1x16xf32> to vector<64x8x16xf32>
    %c64 = arith.constant 64 : index
    %c0_8 = arith.constant 0 : index
    %c0_9 = arith.constant 0 : index
    %7 = vector.load %arg4[%c64, %c0_8, %c0_9] : memref<128x8x16xf32, #tpu.memory_space<vmem>>, vector<64x8x16xf32>
    tpu.vector_store %arg4[%c64, %c0_8, %c0_9], %6 {strides = array<i32>} : memref<128x8x16xf32, #tpu.memory_space<vmem>>, vector<64x8x16xf32>,
    return
  }
  func.func @transform_0(%arg0: i32, %arg1: i32) -> (i32, i32, i32) {
    %c0_i32 = arith.constant 0 : i32
    %c0_i32_0 = arith.constant 0 : i32
    %c0_i32_1 = arith.constant 0 : i32
    return %c0_i32, %arg0, %c0_i32_0 : i32, i32, i32
  }
  func.func @transform_1(%arg0: i32, %arg1: i32) -> (i32, i32, i32) {
    %c0_i32 = arith.constant 0 : i32
    %c0_i32_0 = arith.constant 0 : i32
    %c0_i32_1 = arith.constant 0 : i32
    return %c0_i32, %c0_i32_0, %arg1 : i32, i32, i32
  }
  func.func @transform_2(%arg0: i32, %arg1: i32) -> (i32, i32, i32) {
    %c0_i32 = arith.constant 0 : i32
    %c0_i32_0 = arith.constant 0 : i32
    return %c0_i32, %arg0, %arg1 : i32, i32, i32
  }
}

</mosaic_0001>

<bundles_post_ra>
// kernel: tpu_custom_call.1
= control target key start
LH: loop header
LB: loop body
LE: loop exit
PB: predicated region body
PF: predicated region fallthrough
CT: control target
= control target key end

     0   :  { %s2094_s9 = smov 0   ;;  %s2096_s10 = smov 0   ;;  %s3076_s0 = inlined_call_operand.vmem [shape: f32[64,16,1], index: 0, kind: input, shape index: {}]   ;;  %s3077_s1 = inlined_call_operand.vmem [shape: f32[64,1,16], index: 1, kind: input, shape index: {}]   ;;  %s3078_s2 = inlined_call_operand.vmem [shape: f32[128,16,16], index: 2, kind: output, shape index: {}]  }
   0x1   :  { %s2098_s11 = smov 0   ;;  %s2100_s12 = smov 0  }
   0x2   :  { %s2102_s13 = smov 0  }
   0x3 LB: > { %s24_s14 = sadd.s32 1, %s2072_s12  ;;  %s1852_s15 = sadd.s32 4294967295, %s2076_s13   ;;  %s2076_s13 = sphi %s2102_s13, %s12_s13   ;;  %s2072_s12 = sphi %s2100_s12, %s3083_s12   ;;  %s2068_s11 = sphi %s2098_s11, %s3082_s11   ;;  %s2064_s10 = sphi %s2096_s10, %s3081_s10   ;;  %s2060_s9 = sphi %s2094_s9, %s3080_s9  }
   0x4   : > { %p26_p0 = scmp.ge.s32.totalorder %s24_s14, 2  ;;  %p38_p1 = scmp.ne.s32.totalorder %s2064_s10, %s2060_s9 }
   0x5   : > { %p39_p2 = scmp.eq.s32.totalorder %s2076_s13, 0  ;;  %p96_p4 = scmp.eq.s32.totalorder %s1852_s15, 1 }
   0x6   : > { %s3085_s14 = smov (%p26_p0, %s24_s14), 0  ;;  %s31_s17 = sadd.s32 1, %s2064_s10 }
   0x7   : > { %p40_p3 = por %p39_p2, %p38_p1  ;;  %s28_s16 = ssub.s32 %s2072_s12, %s3085_s14 }
   0x8   : > { %p29_p5 = scmp.eq.s32.totalorder %s28_s16, 0  ;;  %p2129_p6 = por %p96_p4, %p38_p1 }
   0x9   : > { %p1856_p7 = scmp.ge.s32.totalorder %s2076_s13, 2 }
   0xa   : > { %s2134_s19 = scalar_select %p29_p5, %s2064_s10, %s31_s17  }
   0xb   : > { %124 = sbr.rel (%p1856_p7) target bundleno = 84 (0x54), region = 20 }
  0x10   : > { %127 = sbr.rel (!%p40_p3) target bundleno = 84 (0x54), region = 24  ;;  %s129_s20 = sand.u32 (%p40_p3), 1, %s2064_s10  }
  0x11   : > { %s1858_s21 = sshll.u32 (%p40_p3), %s2072_s12, 3  ;;  %s1857_s22 = sshll.u32 (%p40_p3), %s129_s20, 9 }
  0x12   : > { %s2142_s25 = scalar_lea.vmem (%p40_p3), %s3076_s0, %s1858_s21  ;;  %s2147_s26 = scalar_lea.vmem (%p40_p3), [#allocation2], %s1857_s22 }
  0x13   : > { %v288_v0 = vld [vmem:[%s2142_s25] sm:$0xff] (%p40_p3)  ;;  %v290_v1 = vld [vmem:[%s2142_s25 + $0x10] sm:$0xff] (%p40_p3) }
  0x14   : > { %v292_v2 = vld [vmem:[%s2142_s25 + $0x20] sm:$0xff] (%p40_p3)  ;;  %289 = vst [vmem:[%s2147_s26] sm:$0xff] (%p40_p3), %v288_v0  ;;  %v294_v3 = vld [vmem:[%s2142_s25 + $0x30] sm:$0xff] (%p40_p3) }
  0x15   : > { %291 = vst [vmem:[%s2147_s26 + $0x8] sm:$0xff] %v290_v1  ;;  %v296_v4 = vld [vmem:[%s2142_s25 + $0x40] sm:$0xff]  ;;  %v298_v5 = vld [vmem:[%s2142_s25 + $0x50] sm:$0xff] }
  0x16   : > { %293 = vst [vmem:[%s2147_s26 + $0x10] sm:$0xff] %v292_v2  ;;  %v300_v6 = vld [vmem:[%s2142_s25 + $0x60] sm:$0xff]  ;;  %v302_v7 = vld [vmem:[%s2142_s25 + $0x70] sm:$0xff] }
  0x17   : > { %295 = vst [vmem:[%s2147_s26 + $0x18] sm:$0xff] %v294_v3  ;;  %v304_v8 = vld [vmem:[%s2142_s25 + $0x80] sm:$0xff]  ;;  %v306_v9 = vld [vmem:[%s2142_s25 + $0x90] sm:$0xff] }
  0x18   : > { %297 = vst [vmem:[%s2147_s26 + $0x20] sm:$0xff] %v296_v4  ;;  %v308_v10 = vld [vmem:[%s2142_s25 + $0xa0] sm:$0xff]  ;;  %v310_v11 = vld [vmem:[%s2142_s25 + $0xb0] sm:$0xff] }
  0x19   : > { %299 = vst [vmem:[%s2147_s26 + $0x28] sm:$0xff] %v298_v5  ;;  %v312_v12 = vld [vmem:[%s2142_s25 + $0xc0] sm:$0xff]  ;;  %v314_v13 = vld [vmem:[%s2142_s25 + $0xd0] sm:$0xff] }
  0x1a   : > { %301 = vst [vmem:[%s2147_s26 + $0x30] sm:$0xff] %v300_v6  ;;  %v316_v14 = vld [vmem:[%s2142_s25 + $0xe0] sm:$0xff]  ;;  %v318_v15 = vld [vmem:[%s2142_s25 + $0xf0] sm:$0xff] }
  0x1b   : > { %303 = vst [vmem:[%s2147_s26 + $0x38] sm:$0xff] %v302_v7  ;;  %v320_v16 = vld [vmem:[%s2142_s25 + $0x100] sm:$0xff]  ;;  %v322_v17 = vld [vmem:[%s2142_s25 + $0x110] sm:$0xff] }
  0x1c   : > { %305 = vst [vmem:[%s2147_s26 + $0x40] sm:$0xff] %v304_v8  ;;  %v324_v18 = vld [vmem:[%s2142_s25 + $0x120] sm:$0xff]  ;;  %v326_v19 = vld [vmem:[%s2142_s25 + $0x130] sm:$0xff] }
  0x1d   : > { %307 = vst [vmem:[%s2147_s26 + $0x48] sm:$0xff] %v306_v9  ;;  %v328_v20 = vld [vmem:[%s2142_s25 + $0x140] sm:$0xff]  ;;  %v330_v21 = vld [vmem:[%s2142_s25 + $0x150] sm:$0xff] }
  0x1e   : > { %309 = vst [vmem:[%s2147_s26 + $0x50] sm:$0xff] %v308_v10  ;;  %v332_v22 = vld [vmem:[%s2142_s25 + $0x160] sm:$0xff]  ;;  %v334_v23 = vld [vmem:[%s2142_s25 + $0x170] sm:$0xff] }
  0x1f   : > { %311 = vst [vmem:[%s2147_s26 + $0x58] sm:$0xff] %v310_v11  ;;  %v336_v24 = vld [vmem:[%s2142_s25 + $0x180] sm:$0xff]  ;;  %v338_v25 = vld [vmem:[%s2142_s25 + $0x190] sm:$0xff] }
  0x20   : > { %313 = vst [vmem:[%s2147_s26 + $0x60] sm:$0xff] %v312_v12  ;;  %v340_v26 = vld [vmem:[%s2142_s25 + $0x1a0] sm:$0xff]  ;;  %v342_v27 = vld [vmem:[%s2142_s25 + $0x1b0] sm:$0xff] }
  0x21   : > { %315 = vst [vmem:[%s2147_s26 + $0x68] sm:$0xff] %v314_v13  ;;  %v344_v28 = vld [vmem:[%s2142_s25 + $0x1c0] sm:$0xff]  ;;  %v346_v29 = vld [vmem:[%s2142_s25 + $0x1d0] sm:$0xff] }
  0x22   : > { %317 = vst [vmem:[%s2147_s26 + $0x70] sm:$0xff] %v316_v14  ;;  %v348_v30 = vld [vmem:[%s2142_s25 + $0x1e0] sm:$0xff]  ;;  %v350_v31 = vld [vmem:[%s2142_s25 + $0x1f0] sm:$0xff] }
  0x23   : > { %319 = vst [vmem:[%s2147_s26 + $0x78] sm:$0xff] %v318_v15  ;;  %v352_v32 = vld [vmem:[%s2142_s25 + $0x200] sm:$0xff]  ;;  %v354_v33 = vld [vmem:[%s2142_s25 + $0x210] sm:$0xff] }
  0x24   : > { %321 = vst [vmem:[%s2147_s26 + $0x80] sm:$0xff] %v320_v16  ;;  %v356_v34 = vld [vmem:[%s2142_s25 + $0x220] sm:$0xff]  ;;  %v358_v35 = vld [vmem:[%s2142_s25 + $0x230] sm:$0xff] }
  0x25   : > { %323 = vst [vmem:[%s2147_s26 + $0x88] sm:$0xff] %v322_v17  ;;  %v360_v36 = vld [vmem:[%s2142_s25 + $0x240] sm:$0xff]  ;;  %v362_v37 = vld [vmem:[%s2142_s25 + $0x250] sm:$0xff] }
  0x26   : > { %325 = vst [vmem:[%s2147_s26 + $0x90] sm:$0xff] %v324_v18  ;;  %v364_v38 = vld [vmem:[%s2142_s25 + $0x260] sm:$0xff]  ;;  %v366_v39 = vld [vmem:[%s2142_s25 + $0x270] sm:$0xff] }
  0x27   : > { %327 = vst [vmem:[%s2147_s26 + $0x98] sm:$0xff] %v326_v19  ;;  %v368_v40 = vld [vmem:[%s2142_s25 + $0x280] sm:$0xff]  ;;  %v370_v41 = vld [vmem:[%s2142_s25 + $0x290] sm:$0xff] }
  0x28   : > { %329 = vst [vmem:[%s2147_s26 + $0xa0] sm:$0xff] %v328_v20  ;;  %v372_v42 = vld [vmem:[%s2142_s25 + $0x2a0] sm:$0xff]  ;;  %v374_v43 = vld [vmem:[%s2142_s25 + $0x2b0] sm:$0xff] }
  0x29   : > { %331 = vst [vmem:[%s2147_s26 + $0xa8] sm:$0xff] %v330_v21  ;;  %v376_v44 = vld [vmem:[%s2142_s25 + $0x2c0] sm:$0xff]  ;;  %v378_v45 = vld [vmem:[%s2142_s25 + $0x2d0] sm:$0xff] }
  0x2a   : > { %333 = vst [vmem:[%s2147_s26 + $0xb0] sm:$0xff] %v332_v22  ;;  %v380_v46 = vld [vmem:[%s2142_s25 + $0x2e0] sm:$0xff]  ;;  %v382_v47 = vld [vmem:[%s2142_s25 + $0x2f0] sm:$0xff] }
  0x2b   : > { %335 = vst [vmem:[%s2147_s26 + $0xb8] sm:$0xff] %v334_v23  ;;  %v384_v48 = vld [vmem:[%s2142_s25 + $0x300] sm:$0xff]  ;;  %v386_v49 = vld [vmem:[%s2142_s25 + $0x310] sm:$0xff] }
  0x2c   : > { %337 = vst [vmem:[%s2147_s26 + $0xc0] sm:$0xff] %v336_v24  ;;  %v388_v50 = vld [vmem:[%s2142_s25 + $0x320] sm:$0xff]  ;;  %v390_v51 = vld [vmem:[%s2142_s25 + $0x330] sm:$0xff] }
  0x2d   : > { %339 = vst [vmem:[%s2147_s26 + $0xc8] sm:$0xff] %v338_v25  ;;  %v392_v52 = vld [vmem:[%s2142_s25 + $0x340] sm:$0xff]  ;;  %v394_v53 = vld [vmem:[%s2142_s25 + $0x350] sm:$0xff] }
  0x2e   : > { %341 = vst [vmem:[%s2147_s26 + $0xd0] sm:$0xff] %v340_v26  ;;  %v396_v54 = vld [vmem:[%s2142_s25 + $0x360] sm:$0xff]  ;;  %v398_v55 = vld [vmem:[%s2142_s25 + $0x370] sm:$0xff] }
  0x2f   : > { %343 = vst [vmem:[%s2147_s26 + $0xd8] sm:$0xff] %v342_v27  ;;  %v400_v56 = vld [vmem:[%s2142_s25 + $0x380] sm:$0xff]  ;;  %v402_v57 = vld [vmem:[%s2142_s25 + $0x390] sm:$0xff] }
  0x30   : > { %345 = vst [vmem:[%s2147_s26 + $0xe0] sm:$0xff] %v344_v28  ;;  %v404_v58 = vld [vmem:[%s2142_s25 + $0x3a0] sm:$0xff]  ;;  %v406_v59 = vld [vmem:[%s2142_s25 + $0x3b0] sm:$0xff] }
  0x31   : > { %347 = vst [vmem:[%s2147_s26 + $0xe8] sm:$0xff] %v346_v29  ;;  %v408_v60 = vld [vmem:[%s2142_s25 + $0x3c0] sm:$0xff]  ;;  %v410_v61 = vld [vmem:[%s2142_s25 + $0x3d0] sm:$0xff] }
  0x32   : > { %349 = vst [vmem:[%s2147_s26 + $0xf0] sm:$0xff] %v348_v30  ;;  %v412_v62 = vld [vmem:[%s2142_s25 + $0x3e0] sm:$0xff]  ;;  %v414_v63 = vld [vmem:[%s2142_s25 + $0x3f0] sm:$0xff] }
  0x33   : > { %351 = vst [vmem:[%s2147_s26 + $0xf8] sm:$0xff] %v350_v31 }
  0x34   : > { %353 = vst [vmem:[%s2147_s26 + $0x100] sm:$0xff] %v352_v32 }
  0x35   : > { %355 = vst [vmem:[%s2147_s26 + $0x108] sm:$0xff] %v354_v33 }
  0x36   : > { %357 = vst [vmem:[%s2147_s26 + $0x110] sm:$0xff] %v356_v34 }
  0x37   : > { %359 = vst [vmem:[%s2147_s26 + $0x118] sm:$0xff] %v358_v35 }
  0x38   : > { %361 = vst [vmem:[%s2147_s26 + $0x120] sm:$0xff] %v360_v36 }
  0x39   : > { %363 = vst [vmem:[%s2147_s26 + $0x128] sm:$0xff] %v362_v37 }
  0x3a   : > { %365 = vst [vmem:[%s2147_s26 + $0x130] sm:$0xff] %v364_v38 }
  0x3b   : > { %367 = vst [vmem:[%s2147_s26 + $0x138] sm:$0xff] %v366_v39 }
  0x3c   : > { %369 = vst [vmem:[%s2147_s26 + $0x140] sm:$0xff] %v368_v40 }
  0x3d   : > { %371 = vst [vmem:[%s2147_s26 + $0x148] sm:$0xff] %v370_v41 }
  0x3e   : > { %373 = vst [vmem:[%s2147_s26 + $0x150] sm:$0xff] %v372_v42 }
  0x3f   : > { %375 = vst [vmem:[%s2147_s26 + $0x158] sm:$0xff] %v374_v43 }
  0x40   : > { %377 = vst [vmem:[%s2147_s26 + $0x160] sm:$0xff] %v376_v44 }
  0x41   : > { %379 = vst [vmem:[%s2147_s26 + $0x168] sm:$0xff] %v378_v45 }
  0x42   : > { %381 = vst [vmem:[%s2147_s26 + $0x170] sm:$0xff] %v380_v46 }
  0x43   : > { %383 = vst [vmem:[%s2147_s26 + $0x178] sm:$0xff] %v382_v47 }
  0x44   : > { %385 = vst [vmem:[%s2147_s26 + $0x180] sm:$0xff] %v384_v48 }
  0x45   : > { %387 = vst [vmem:[%s2147_s26 + $0x188] sm:$0xff] %v386_v49 }
  0x46   : > { %389 = vst [vmem:[%s2147_s26 + $0x190] sm:$0xff] %v388_v50 }
  0x47   : > { %391 = vst [vmem:[%s2147_s26 + $0x198] sm:$0xff] %v390_v51 }
  0x48   : > { %393 = vst [vmem:[%s2147_s26 + $0x1a0] sm:$0xff] %v392_v52 }
  0x49   : > { %395 = vst [vmem:[%s2147_s26 + $0x1a8] sm:$0xff] %v394_v53 }
  0x4a   : > { %397 = vst [vmem:[%s2147_s26 + $0x1b0] sm:$0xff] %v396_v54 }
  0x4b   : > { %399 = vst [vmem:[%s2147_s26 + $0x1b8] sm:$0xff] %v398_v55 }
  0x4c   : > { %401 = vst [vmem:[%s2147_s26 + $0x1c0] sm:$0xff] %v400_v56 }
  0x4d   : > { %403 = vst [vmem:[%s2147_s26 + $0x1c8] sm:$0xff] %v402_v57 }
  0x4e   : > { %405 = vst [vmem:[%s2147_s26 + $0x1d0] sm:$0xff] %v404_v58 }
  0x4f   : > { %407 = vst [vmem:[%s2147_s26 + $0x1d8] sm:$0xff] %v406_v59 }
  0x50   : > { %409 = vst [vmem:[%s2147_s26 + $0x1e0] sm:$0xff] %v408_v60 }
  0x51   : > { %411 = vst [vmem:[%s2147_s26 + $0x1e8] sm:$0xff] %v410_v61 }
  0x52   : > { %413 = vst [vmem:[%s2147_s26 + $0x1f0] sm:$0xff] %v412_v62 }
  0x53   : > { %415 = vst [vmem:[%s2147_s26 + $0x1f8] sm:$0xff] %v414_v63 }
  0x54 PF: > { %p1859_p8 = scmp.ge.s32.totalorder %s2076_s13, 1  ;;  %p420_p9 = scmp.lt.s32.totalorder %s2076_s13, 3 }
  0x56   : > { %p421_p10 = pnand %p1859_p8, %p420_p9 }
  0x57   : > { %s427_s27 = sand.u32 (!%p421_p10), 1, %s2060_s9  }
  0x58   : > { %424 = sbr.rel (%p421_p10) target bundleno = 473 (0x1d9), region = 62  ;;  %s1860_s28 = sshll.u32 (!%p421_p10), %s427_s27, 9 }
  0x59   : > { %s2279_s29 = scalar_lea.vmem (!%p421_p10), [#allocation2], %s1860_s28  ;;  %s1861_s30 = sshll.u32 (!%p421_p10), %s427_s27, 10 }
  0x5a   : > { %s2319_s3 = scalar_lea.vmem (!%p421_p10), [#allocation3], %s1861_s30 }
  0x5d   : > { %v2078_v0 = vmov 0   ;;  %v457_v1 = vld [vmem:[%s2279_s29 + $0x20] sm:$0xff]  ;;  %v455_v2 = vld [vmem:[%s2279_s29 + $0x10] sm:$0xff]  ;;  %v458_v4 = vld [vmem:[%s2279_s29 + $0x28] sm:$0xff]  ;;  %vm837_vm0 = vcmask 130048   ;;  %s1927_s17 = sshll.u32 (%p2129_p6), %s2068_s11, 3 }
  0x5e   : > { %1973 = vset.pattern.permute.xlu2 %v2078_v0  ;;  %1972 = vset.pattern.permute.xlu1 %v2078_v0  ;;  %v453_v3 = vld [vmem:[%s2279_s29] sm:$0xff]  ;;  %v456_v5 = vld [vmem:[%s2279_s29 + $0x18] sm:$0xff]  ;;  %v454_v6 = vld [vmem:[%s2279_s29 + $0x8] sm:$0xff]  ;;  %s2805_s22 = scalar_lea.vmem (%p2129_p6), %s3078_s2, %s1927_s17 }
  0x5f   : > { %1971 = vset.pattern.permute.xlu0 %v2078_v0  ;;  %539 = vperm.xlu2 %1973, %v457_v1   ;;  %v461_v7 = vld [vmem:[%s2279_s29 + $0x40] sm:$0xff]  ;;  %v460_v8 = vld [vmem:[%s2279_s29 + $0x38] sm:$0xff]  ;;  %v459_v9 = vld [vmem:[%s2279_s29 + $0x30] sm:$0xff] }
  0x60   : > { %529 = vperm.xlu1 %1972, %v455_v2   ;;  %519 = vperm.xlu0 %1971, %v453_v3   ;;  %v464_v10 = vld [vmem:[%s2279_s29 + $0x58] sm:$0xff]  ;;  %v463_v11 = vld [vmem:[%s2279_s29 + $0x50] sm:$0xff]  ;;  %v462_v12 = vld [vmem:[%s2279_s29 + $0x48] sm:$0xff] }
  0x61   : > { %v467_v13 = vld [vmem:[%s2279_s29 + $0x70] sm:$0xff]  ;;  %v466_v14 = vld [vmem:[%s2279_s29 + $0x68] sm:$0xff]  ;;  %v465_v15 = vld [vmem:[%s2279_s29 + $0x60] sm:$0xff] }
  0x62   : > { %v470_v16 = vld [vmem:[%s2279_s29 + $0x88] sm:$0xff]  ;;  %v469_v17 = vld [vmem:[%s2279_s29 + $0x80] sm:$0xff]  ;;  %v468_v18 = vld [vmem:[%s2279_s29 + $0x78] sm:$0xff] }
  0x63   : > { %v473_v19 = vld [vmem:[%s2279_s29 + $0xa0] sm:$0xff]  ;;  %v472_v20 = vld [vmem:[%s2279_s29 + $0x98] sm:$0xff]  ;;  %v471_v21 = vld [vmem:[%s2279_s29 + $0x90] sm:$0xff] }
  0x64   : > { %v476_v22 = vld [vmem:[%s2279_s29 + $0xb8] sm:$0xff]  ;;  %v475_v23 = vld [vmem:[%s2279_s29 + $0xb0] sm:$0xff]  ;;  %v474_v24 = vld [vmem:[%s2279_s29 + $0xa8] sm:$0xff] }
  0x65   : > { %v479_v25 = vld [vmem:[%s2279_s29 + $0xd0] sm:$0xff]  ;;  %v478_v26 = vld [vmem:[%s2279_s29 + $0xc8] sm:$0xff]  ;;  %v477_v27 = vld [vmem:[%s2279_s29 + $0xc0] sm:$0xff] }
  0x66   : > { %v482_v28 = vld [vmem:[%s2279_s29 + $0xe8] sm:$0xff]  ;;  %v481_v29 = vld [vmem:[%s2279_s29 + $0xe0] sm:$0xff]  ;;  %v480_v30 = vld [vmem:[%s2279_s29 + $0xd8] sm:$0xff] }
  0x67   : > { %544 = vperm.xlu2 %1973, %v458_v4   ;;  %v485_v31 = vld [vmem:[%s2279_s29 + $0x100] sm:$0xff]  ;;  %v484_v32 = vld [vmem:[%s2279_s29 + $0xf8] sm:$0xff]  ;;  %v483_v33 = vld [vmem:[%s2279_s29 + $0xf0] sm:$0xff] }
  0x68   : > { %534 = vperm.xlu1 %1972, %v456_v5   ;;  %524 = vperm.xlu0 %1971, %v454_v6   ;;  %v488_v34 = vld [vmem:[%s2279_s29 + $0x118] sm:$0xff]  ;;  %v487_v35 = vld [vmem:[%s2279_s29 + $0x110] sm:$0xff]  ;;  %v486_v36 = vld [vmem:[%s2279_s29 + $0x108] sm:$0xff] }
  0x69   : > { %v491_v38 = vld [vmem:[%s2279_s29 + $0x130] sm:$0xff]  ;;  %v490_v39 = vld [vmem:[%s2279_s29 + $0x128] sm:$0xff]  ;;  %v489_v40 = vld [vmem:[%s2279_s29 + $0x120] sm:$0xff] }
  0x6a   : > { %v494_v42 = vld [vmem:[%s2279_s29 + $0x148] sm:$0xff]  ;;  %v493_v43 = vld [vmem:[%s2279_s29 + $0x140] sm:$0xff]  ;;  %v492_v44 = vld [vmem:[%s2279_s29 + $0x138] sm:$0xff] }
  0x6b   : > { %v497_v46 = vld [vmem:[%s2279_s29 + $0x160] sm:$0xff]  ;;  %v496_v47 = vld [vmem:[%s2279_s29 + $0x158] sm:$0xff]  ;;  %v495_v48 = vld [vmem:[%s2279_s29 + $0x150] sm:$0xff] }
  0x6c   : > { %v500_v52 = vld [vmem:[%s2279_s29 + $0x178] sm:$0xff]  ;;  %v499_v53 = vld [vmem:[%s2279_s29 + $0x170] sm:$0xff]  ;;  %v498_v54 = vld [vmem:[%s2279_s29 + $0x168] sm:$0xff] }
  0x6d   : > { %v503_v58 = vld [vmem:[%s2279_s29 + $0x190] sm:$0xff]  ;;  %v502_v59 = vld [vmem:[%s2279_s29 + $0x188] sm:$0xff]  ;;  %v501_v60 = vld [vmem:[%s2279_s29 + $0x180] sm:$0xff] }
  0x6e   : > { %v506_v0 = vld [vmem:[%s2279_s29 + $0x1a8] sm:$0xff]  ;;  %v505_v1 = vld [vmem:[%s2279_s29 + $0x1a0] sm:$0xff]  ;;  %v504_v2 = vld [vmem:[%s2279_s29 + $0x198] sm:$0xff] }
  0x6f   : > { %559 = vperm.xlu2 %1973, %v461_v7   ;;  %v509_v6 = vld [vmem:[%s2279_s29 + $0x1c0] sm:$0xff]  ;;  %v508_v7 = vld [vmem:[%s2279_s29 + $0x1b8] sm:$0xff] }
  0x70   : > { %554 = vperm.xlu1 %1972, %v460_v8   ;;  %549 = vperm.xlu0 %1971, %v459_v9   ;;  %v507_v8 = vld [vmem:[%s2279_s29 + $0x1b0] sm:$0xff] }
  0x77   : > { %574 = vperm.xlu2 %1973, %v464_v10  }
  0x78   : > { %569 = vperm.xlu1 %1972, %v463_v11   ;;  %564 = vperm.xlu0 %1971, %v462_v12   ;;  %v512_v12 = vld [vmem:[%s2279_s29 + $0x1d8] sm:$0xff] }
  0x7f   : > { %589 = vperm.xlu2 %1973, %v467_v13   ;;  %v511_v13 = vld [vmem:[%s2279_s29 + $0x1d0] sm:$0xff] }
  0x80   : > { %584 = vperm.xlu1 %1972, %v466_v14   ;;  %579 = vperm.xlu0 %1971, %v465_v15   ;;  %v510_v14 = vld [vmem:[%s2279_s29 + $0x1c8] sm:$0xff] }
  0x87   : > { %604 = vperm.xlu2 %1973, %v470_v16  }
  0x88   : > { %599 = vperm.xlu1 %1972, %v469_v17   ;;  %594 = vperm.xlu0 %1971, %v468_v18   ;;  %v515_v18 = vld [vmem:[%s2279_s29 + $0x1f0] sm:$0xff] }
  0x8f   : > { %619 = vperm.xlu2 %1973, %v473_v19   ;;  %v514_v19 = vld [vmem:[%s2279_s29 + $0x1e8] sm:$0xff] }
  0x90   : > { %614 = vperm.xlu1 %1972, %v472_v20   ;;  %609 = vperm.xlu0 %1971, %v471_v21   ;;  %v513_v20 = vld [vmem:[%s2279_s29 + $0x1e0] sm:$0xff] }
  0x97   : > { %634 = vperm.xlu2 %1973, %v476_v22  }
  0x98   : > { %629 = vperm.xlu1 %1972, %v475_v23   ;;  %624 = vperm.xlu0 %1971, %v474_v24   ;;  %v516_v24 = vld [vmem:[%s2279_s29 + $0x1f8] sm:$0xff] }
  0x9f   : > { %649 = vperm.xlu2 %1973, %v479_v25  }
  0xa0   : > { %644 = vperm.xlu1 %1972, %v478_v26   ;;  %639 = vperm.xlu0 %1971, %v477_v27  }
  0xa7   : > { %664 = vperm.xlu2 %1973, %v482_v28  }
  0xa8   : > { %659 = vperm.xlu1 %1972, %v481_v29   ;;  %654 = vperm.xlu0 %1971, %v480_v30  }
  0xaf   : > { %679 = vperm.xlu2 %1973, %v485_v31  }
  0xb0   : > { %674 = vperm.xlu1 %1972, %v484_v32   ;;  %669 = vperm.xlu0 %1971, %v483_v33  }
  0xb7   : > { %694 = vperm.xlu2 %1973, %v488_v34  }
  0xb8   : > { %689 = vperm.xlu1 %1972, %v487_v35   ;;  %684 = vperm.xlu0 %1971, %v486_v36  }
  0xb9   : > { %v540_v37 = vpop.permute.xlu2 %539 }
  0xba   : > { %842 = vst.msk [vmem:[%s2319_s3 + $0x20] sm:$0xff] %vm837_vm0, %v540_v37 }
  0xbf   : > { %709 = vperm.xlu2 %1973, %v491_v38  }
  0xc0   : > { %704 = vperm.xlu1 %1972, %v490_v39   ;;  %699 = vperm.xlu0 %1971, %v489_v40  }
  0xc1   : > { %v545_v41 = vpop.permute.xlu2 %544 }
  0xc2   : > { %843 = vst.msk [vmem:[%s2319_s3 + $0x28] sm:$0xff] %vm837_vm0, %v545_v41 }
  0xc7   : > { %724 = vperm.xlu2 %1973, %v494_v42  }
  0xc8   : > { %719 = vperm.xlu1 %1972, %v493_v43   ;;  %714 = vperm.xlu0 %1971, %v492_v44  }
  0xc9   : > { %v560_v45 = vpop.permute.xlu2 %559 }
  0xca   : > { %846 = vst.msk [vmem:[%s2319_s3 + $0x40] sm:$0xff] %vm837_vm0, %v560_v45 }
  0xcf   : > { %739 = vperm.xlu2 %1973, %v497_v46  }
  0xd0   : > { %734 = vperm.xlu1 %1972, %v496_v47   ;;  %729 = vperm.xlu0 %1971, %v495_v48  }
  0xd1   : > { %v575_v49 = vpop.permute.xlu2 %574 }
  0xd2   : > { %v530_v50 = vpop.permute.xlu1 %529  ;;  %849 = vst.msk [vmem:[%s2319_s3 + $0x58] sm:$0xff] %vm837_vm0, %v575_v49  ;;  %v520_v51 = vpop.permute.xlu0 %519 }
  0xd3   : > { %840 = vst.msk [vmem:[%s2319_s3 + $0x10] sm:$0xff] %vm837_vm0, %v530_v50 }
  0xd4   : > { %838 = vst.msk [vmem:[%s2319_s3] sm:$0xff] %vm837_vm0, %v520_v51 }
  0xd7   : > { %754 = vperm.xlu2 %1973, %v500_v52  }
  0xd8   : > { %749 = vperm.xlu1 %1972, %v499_v53   ;;  %744 = vperm.xlu0 %1971, %v498_v54  }
  0xd9   : > { %v590_v55 = vpop.permute.xlu2 %589 }
  0xda   : > { %v535_v56 = vpop.permute.xlu1 %534  ;;  %852 = vst.msk [vmem:[%s2319_s3 + $0x70] sm:$0xff] %vm837_vm0, %v590_v55  ;;  %v525_v57 = vpop.permute.xlu0 %524 }
  0xdb   : > { %841 = vst.msk [vmem:[%s2319_s3 + $0x18] sm:$0xff] %vm837_vm0, %v535_v56 }
  0xdc   : > { %839 = vst.msk [vmem:[%s2319_s3 + $0x8] sm:$0xff] %vm837_vm0, %v525_v57 }
  0xdf   : > { %769 = vperm.xlu2 %1973, %v503_v58  }
  0xe0   : > { %764 = vperm.xlu1 %1972, %v502_v59   ;;  %759 = vperm.xlu0 %1971, %v501_v60  }
  0xe1   : > { %v605_v61 = vpop.permute.xlu2 %604 }
  0xe2   : > { %v555_v62 = vpop.permute.xlu1 %554  ;;  %855 = vst.msk [vmem:[%s2319_s3 + $0x88] sm:$0xff] %vm837_vm0, %v605_v61  ;;  %v550_v63 = vpop.permute.xlu0 %549 }
  0xe3   : > { %845 = vst.msk [vmem:[%s2319_s3 + $0x38] sm:$0xff] %vm837_vm0, %v555_v62  ;;  %v1974_v62 = vld [vmem:[%s3077_s1] ss:$0 sm:$0xff] }
  0xe4   : > { %844 = vst.msk [vmem:[%s2319_s3 + $0x30] sm:$0xff] %vm837_vm0, %v550_v63  ;;  %v1975_v63 = vld [vmem:[%s3077_s1 + $0x1] ss:$0 sm:$0xff] }
  0xe5   : > { %1862 = vst.msk [vmem:[%s2319_s3 + $0x200] sm:$0xff] %vm837_vm0, %v1974_v62  ;;  %v2035_v62 = vld [vmem:[%s3077_s1 + $0x3d] ss:$0 sm:$0xff] }
  0xe6   : > { %1863 = vst.msk [vmem:[%s2319_s3 + $0x208] sm:$0xff] %vm837_vm0, %v1975_v63  ;;  %v2036_v63 = vld [vmem:[%s3077_s1 + $0x3e] ss:$0 sm:$0xff] }
  0xe7   : > { %784 = vperm.xlu2 %1973, %v506_v0   ;;  %1923 = vst.msk [vmem:[%s2319_s3 + $0x3e8] sm:$0xff] %vm837_vm0, %v2035_v62 }
  0xe8   : > { %779 = vperm.xlu1 %1972, %v505_v1   ;;  %774 = vperm.xlu0 %1971, %v504_v2   ;;  %v1976_v1 = vld [vmem:[%s3077_s1 + $0x2] ss:$0 sm:$0xff]  ;;  %1924 = vst.msk [vmem:[%s2319_s3 + $0x3f0] sm:$0xff] %vm837_vm0, %v2036_v63 }
  0xe9   : > { %v620_v3 = vpop.permute.xlu2 %619  ;;  %1864 = vst.msk [vmem:[%s2319_s3 + $0x210] sm:$0xff] %vm837_vm0, %v1976_v1  ;;  %v1515_v1 = vld [vmem:[%s2319_s3] sm:$0xff] (%p2129_p6) }
  0xea   : > { %v570_v4 = vpop.permute.xlu1 %569  ;;  %858 = vst.msk [vmem:[%s2319_s3 + $0xa0] sm:$0xff] %vm837_vm0, %v620_v3  ;;  %v565_v5 = vpop.permute.xlu0 %564  ;;  %v1977_v3 = vld [vmem:[%s3077_s1 + $0x3] ss:$0 sm:$0xff] }
  0xeb   : > { %848 = vst.msk [vmem:[%s2319_s3 + $0x50] sm:$0xff] %vm837_vm0, %v570_v4  ;;  %v1978_v4 = vld [vmem:[%s3077_s1 + $0x4] ss:$0 sm:$0xff] }
  0xec   : > { %847 = vst.msk [vmem:[%s2319_s3 + $0x48] sm:$0xff] %vm837_vm0, %v565_v5  ;;  %v1979_v5 = vld [vmem:[%s3077_s1 + $0x5] ss:$0 sm:$0xff] }
  0xed   : > { %1865 = vst.msk [vmem:[%s2319_s3 + $0x218] sm:$0xff] %vm837_vm0, %v1977_v3  ;;  %v1519_v3 = vld [vmem:[%s2319_s3 + $0x10] sm:$0xff] (%p2129_p6) }
  0xee   : > { %1866 = vst.msk [vmem:[%s2319_s3 + $0x220] sm:$0xff] %vm837_vm0, %v1978_v4  ;;  %v1521_v4 = vld [vmem:[%s2319_s3 + $0x18] sm:$0xff] (%p2129_p6) }
  0xef   : > { %799 = vperm.xlu2 %1973, %v509_v6   ;;  %v1980_v6 = vld [vmem:[%s3077_s1 + $0x6] ss:$0 sm:$0xff]  ;;  %1867 = vst.msk [vmem:[%s2319_s3 + $0x228] sm:$0xff] %vm837_vm0, %v1979_v5 }
  0xf0   : > { %794 = vperm.xlu1 %1972, %v508_v7   ;;  %789 = vperm.xlu0 %1971, %v507_v8   ;;  %v1981_v7 = vld [vmem:[%s3077_s1 + $0x7] ss:$0 sm:$0xff]  ;;  %v1982_v8 = vld [vmem:[%s3077_s1 + $0x8] ss:$0 sm:$0xff]  ;;  %1868 = vst.msk [vmem:[%s2319_s3 + $0x230] sm:$0xff] %vm837_vm0, %v1980_v6 }
  0xf1   : > { %v635_v9 = vpop.permute.xlu2 %634  ;;  %1869 = vst.msk [vmem:[%s2319_s3 + $0x238] sm:$0xff] %vm837_vm0, %v1981_v7  ;;  %v1523_v5 = vld [vmem:[%s2319_s3 + $0x20] sm:$0xff] (%p2129_p6)  ;;  %v1525_v6 = vld [vmem:[%s2319_s3 + $0x28] sm:$0xff] (%p2129_p6)  ;;  %v1527_v7 = vld [vmem:[%s2319_s3 + $0x30] sm:$0xff] (%p2129_p6) }
  0xf2   : > { %v585_v10 = vpop.permute.xlu1 %584  ;;  %861 = vst.msk [vmem:[%s2319_s3 + $0xb8] sm:$0xff] %vm837_vm0, %v635_v9  ;;  %v580_v11 = vpop.permute.xlu0 %579  ;;  %v1983_v9 = vld [vmem:[%s3077_s1 + $0x9] ss:$0 sm:$0xff] }
  0xf3   : > { %851 = vst.msk [vmem:[%s2319_s3 + $0x68] sm:$0xff] %vm837_vm0, %v585_v10 }
  0xf4   : > { %850 = vst.msk [vmem:[%s2319_s3 + $0x60] sm:$0xff] %vm837_vm0, %v580_v11  ;;  %v1984_v11 = vld [vmem:[%s3077_s1 + $0xa] ss:$0 sm:$0xff] }
  0xf5   : > { %1870 = vst.msk [vmem:[%s2319_s3 + $0x240] sm:$0xff] %vm837_vm0, %v1982_v8  ;;  %v1529_v8 = vld [vmem:[%s2319_s3 + $0x38] sm:$0xff] (%p2129_p6) }
  0xf6   : > { %1871 = vst.msk [vmem:[%s2319_s3 + $0x248] sm:$0xff] %vm837_vm0, %v1983_v9  ;;  %v1531_v9 = vld [vmem:[%s2319_s3 + $0x40] sm:$0xff] (%p2129_p6) }
  0xf7   : > { %814 = vperm.xlu2 %1973, %v512_v12   ;;  %v1985_v12 = vld [vmem:[%s3077_s1 + $0xb] ss:$0 sm:$0xff]  ;;  %1872 = vst.msk [vmem:[%s2319_s3 + $0x250] sm:$0xff] %vm837_vm0, %v1984_v11  ;;  %v1535_v11 = vld [vmem:[%s2319_s3 + $0x50] sm:$0xff] (%p2129_p6) }
  0xf8   : > { %809 = vperm.xlu1 %1972, %v511_v13   ;;  %804 = vperm.xlu0 %1971, %v510_v14   ;;  %v1986_v13 = vld [vmem:[%s3077_s1 + $0xc] ss:$0 sm:$0xff]  ;;  %v1987_v14 = vld [vmem:[%s3077_s1 + $0xd] ss:$0 sm:$0xff]  ;;  %1873 = vst.msk [vmem:[%s2319_s3 + $0x258] sm:$0xff] %vm837_vm0, %v1985_v12  ;;  %v1537_v12 = vld [vmem:[%s2319_s3 + $0x58] sm:$0xff] (%p2129_p6) }
  0xf9   : > { %v650_v15 = vpop.permute.xlu2 %649  ;;  %1874 = vst.msk [vmem:[%s2319_s3 + $0x260] sm:$0xff] %vm837_vm0, %v1986_v13 }
  0xfa   : > { %v600_v16 = vpop.permute.xlu1 %599  ;;  %864 = vst.msk [vmem:[%s2319_s3 + $0xd0] sm:$0xff] %vm837_vm0, %v650_v15  ;;  %v595_v17 = vpop.permute.xlu0 %594  ;;  %v1988_v15 = vld [vmem:[%s3077_s1 + $0xe] ss:$0 sm:$0xff] }
  0xfb   : > { %854 = vst.msk [vmem:[%s2319_s3 + $0x80] sm:$0xff] %vm837_vm0, %v600_v16  ;;  %v1989_v16 = vld [vmem:[%s3077_s1 + $0xf] ss:$0 sm:$0xff]  ;;  %v1539_v13 = vld [vmem:[%s2319_s3 + $0x60] sm:$0xff] (%p2129_p6) }
  0xfc   : > { %853 = vst.msk [vmem:[%s2319_s3 + $0x78] sm:$0xff] %vm837_vm0, %v595_v17  ;;  %v1990_v17 = vld [vmem:[%s3077_s1 + $0x10] ss:$0 sm:$0xff] }
  0xfd   : > { %1875 = vst.msk [vmem:[%s2319_s3 + $0x268] sm:$0xff] %vm837_vm0, %v1987_v14  ;;  %v1541_v14 = vld [vmem:[%s2319_s3 + $0x68] sm:$0xff] (%p2129_p6) }
  0xfe   : > { %1876 = vst.msk [vmem:[%s2319_s3 + $0x270] sm:$0xff] %vm837_vm0, %v1988_v15  ;;  %v1543_v15 = vld [vmem:[%s2319_s3 + $0x70] sm:$0xff] (%p2129_p6) }
  0xff   : > { %829 = vperm.xlu2 %1973, %v515_v18   ;;  %v1991_v18 = vld [vmem:[%s3077_s1 + $0x11] ss:$0 sm:$0xff]  ;;  %1877 = vst.msk [vmem:[%s2319_s3 + $0x278] sm:$0xff] %vm837_vm0, %v1989_v16 }
 0x100   : > { %824 = vperm.xlu1 %1972, %v514_v19   ;;  %819 = vperm.xlu0 %1971, %v513_v20   ;;  %v1992_v19 = vld [vmem:[%s3077_s1 + $0x12] ss:$0 sm:$0xff]  ;;  %v1993_v20 = vld [vmem:[%s3077_s1 + $0x13] ss:$0 sm:$0xff]  ;;  %1878 = vst.msk [vmem:[%s2319_s3 + $0x280] sm:$0xff] %vm837_vm0, %v1990_v17 }
 0x101   : > { %v665_v21 = vpop.permute.xlu2 %664  ;;  %1879 = vst.msk [vmem:[%s2319_s3 + $0x288] sm:$0xff] %vm837_vm0, %v1991_v18  ;;  %v1549_v18 = vld [vmem:[%s2319_s3 + $0x88] sm:$0xff] (%p2129_p6) }
 0x102   : > { %v615_v22 = vpop.permute.xlu1 %614  ;;  %867 = vst.msk [vmem:[%s2319_s3 + $0xe8] sm:$0xff] %vm837_vm0, %v665_v21  ;;  %v610_v23 = vpop.permute.xlu0 %609  ;;  %v1994_v21 = vld [vmem:[%s3077_s1 + $0x14] ss:$0 sm:$0xff]  ;;  %v1547_v17 = vld [vmem:[%s2319_s3 + $0x80] sm:$0xff] (%p2129_p6) }
 0x103   : > { %857 = vst.msk [vmem:[%s2319_s3 + $0x98] sm:$0xff] %vm837_vm0, %v615_v22  ;;  %v1995_v22 = vld [vmem:[%s3077_s1 + $0x15] ss:$0 sm:$0xff]  ;;  %v1545_v16 = vld [vmem:[%s2319_s3 + $0x78] sm:$0xff] (%p2129_p6) }
 0x104   : > { %856 = vst.msk [vmem:[%s2319_s3 + $0x90] sm:$0xff] %vm837_vm0, %v610_v23  ;;  %v1996_v23 = vld [vmem:[%s3077_s1 + $0x16] ss:$0 sm:$0xff] }
 0x105   : > { %1880 = vst.msk [vmem:[%s2319_s3 + $0x290] sm:$0xff] %vm837_vm0, %v1992_v19 }
 0x106   : > { %1881 = vst.msk [vmem:[%s2319_s3 + $0x298] sm:$0xff] %vm837_vm0, %v1993_v20 }
 0x107   : > { %1882 = vst.msk [vmem:[%s2319_s3 + $0x2a0] sm:$0xff] %vm837_vm0, %v1994_v21  ;;  %v1555_v21 = vld [vmem:[%s2319_s3 + $0xa0] sm:$0xff] (%p2129_p6) }
 0x108   : > { %834 = vperm.xlu0 %1971, %v516_v24   ;;  %v1997_v24 = vld [vmem:[%s3077_s1 + $0x17] ss:$0 sm:$0xff]  ;;  %1883 = vst.msk [vmem:[%s2319_s3 + $0x2a8] sm:$0xff] %vm837_vm0, %v1995_v22 }
 0x109   : > { %v680_v25 = vpop.permute.xlu2 %679  ;;  %1884 = vst.msk [vmem:[%s2319_s3 + $0x2b0] sm:$0xff] %vm837_vm0, %v1996_v23 }
 0x10a   : > { %v630_v26 = vpop.permute.xlu1 %629  ;;  %870 = vst.msk [vmem:[%s2319_s3 + $0x100] sm:$0xff] %vm837_vm0, %v680_v25  ;;  %v625_v27 = vpop.permute.xlu0 %624  ;;  %v1998_v25 = vld [vmem:[%s3077_s1 + $0x18] ss:$0 sm:$0xff] }
 0x10b   : > { %860 = vst.msk [vmem:[%s2319_s3 + $0xb0] sm:$0xff] %vm837_vm0, %v630_v26  ;;  %v1999_v26 = vld [vmem:[%s3077_s1 + $0x19] ss:$0 sm:$0xff]  ;;  %v1551_v19 = vld [vmem:[%s2319_s3 + $0x90] sm:$0xff] (%p2129_p6) }
 0x10c   : > { %859 = vst.msk [vmem:[%s2319_s3 + $0xa8] sm:$0xff] %vm837_vm0, %v625_v27  ;;  %v2000_v27 = vld [vmem:[%s3077_s1 + $0x1a] ss:$0 sm:$0xff] }
 0x10d   : > { %1885 = vst.msk [vmem:[%s2319_s3 + $0x2b8] sm:$0xff] %vm837_vm0, %v1997_v24  ;;  %v1553_v20 = vld [vmem:[%s2319_s3 + $0x98] sm:$0xff] (%p2129_p6) }
 0x10e   : > { %1886 = vst.msk [vmem:[%s2319_s3 + $0x2c0] sm:$0xff] %vm837_vm0, %v1998_v25  ;;  %v1561_v24 = vld [vmem:[%s2319_s3 + $0xb8] sm:$0xff] (%p2129_p6) }
 0x10f   : > { %1887 = vst.msk [vmem:[%s2319_s3 + $0x2c8] sm:$0xff] %vm837_vm0, %v1999_v26 }
 0x110   : > { %1888 = vst.msk [vmem:[%s2319_s3 + $0x2d0] sm:$0xff] %vm837_vm0, %v2000_v27  ;;  %v1567_v27 = vld [vmem:[%s2319_s3 + $0xd0] sm:$0xff] (%p2129_p6) }
 0x111   : > { %v695_v28 = vpop.permute.xlu2 %694  ;;  %1516 = vst [vmem:[%s2805_s22] sm:$0xff] (%p2129_p6), %v1515_v1  ;;  %v1643_v1 = vld [vmem:[%s2319_s3 + $0x200] sm:$0xff] (%p2129_p6) }
 0x112   : > { %v645_v29 = vpop.permute.xlu1 %644  ;;  %873 = vst.msk [vmem:[%s2319_s3 + $0x118] sm:$0xff] %vm837_vm0, %v695_v28  ;;  %v640_v30 = vpop.permute.xlu0 %639  ;;  %v2001_v28 = vld [vmem:[%s3077_s1 + $0x1b] ss:$0 sm:$0xff]  ;;  %v1559_v23 = vld [vmem:[%s2319_s3 + $0xb0] sm:$0xff] (%p2129_p6) }
 0x113   : > { %863 = vst.msk [vmem:[%s2319_s3 + $0xc8] sm:$0xff] %vm837_vm0, %v645_v29  ;;  %v2002_v29 = vld [vmem:[%s3077_s1 + $0x1c] ss:$0 sm:$0xff]  ;;  %v1557_v22 = vld [vmem:[%s2319_s3 + $0xa8] sm:$0xff] (%p2129_p6) }
 0x114   : > { %862 = vst.msk [vmem:[%s2319_s3 + $0xc0] sm:$0xff] %vm837_vm0, %v640_v30  ;;  %v2003_v30 = vld [vmem:[%s3077_s1 + $0x1d] ss:$0 sm:$0xff] }
 0x115   : > { %1889 = vst.msk [vmem:[%s2319_s3 + $0x2d8] sm:$0xff] %vm837_vm0, %v2001_v28 }
 0x116   : > { %1890 = vst.msk [vmem:[%s2319_s3 + $0x2e0] sm:$0xff] %vm837_vm0, %v2002_v29 }
 0x117   : > { %1891 = vst.msk [vmem:[%s2319_s3 + $0x2e8] sm:$0xff] %vm837_vm0, %v2003_v30  ;;  %v1573_v30 = vld [vmem:[%s2319_s3 + $0xe8] sm:$0xff] (%p2129_p6) }
 0x118   : > { %1520 = vst [vmem:[%s2805_s22 + $0x20] sm:$0xff] (%p2129_p6), %v1519_v3  ;;  %v1647_v3 = vld [vmem:[%s2319_s3 + $0x210] sm:$0xff] (%p2129_p6) }
 0x119   : > { %v710_v31 = vpop.permute.xlu2 %709  ;;  %1522 = vst [vmem:[%s2805_s22 + $0x30] sm:$0xff] (%p2129_p6), %v1521_v4  ;;  %v1649_v4 = vld [vmem:[%s2319_s3 + $0x218] sm:$0xff] (%p2129_p6) }
 0x11a   : > { %v660_v32 = vpop.permute.xlu1 %659  ;;  %876 = vst.msk [vmem:[%s2319_s3 + $0x130] sm:$0xff] %vm837_vm0, %v710_v31  ;;  %v655_v33 = vpop.permute.xlu0 %654  ;;  %v2004_v31 = vld [vmem:[%s3077_s1 + $0x1e] ss:$0 sm:$0xff]  ;;  %v1565_v26 = vld [vmem:[%s2319_s3 + $0xc8] sm:$0xff] (%p2129_p6) }
 0x11b   : > { %866 = vst.msk [vmem:[%s2319_s3 + $0xe0] sm:$0xff] %vm837_vm0, %v660_v32  ;;  %v2005_v32 = vld [vmem:[%s3077_s1 + $0x1f] ss:$0 sm:$0xff]  ;;  %v1563_v25 = vld [vmem:[%s2319_s3 + $0xc0] sm:$0xff] (%p2129_p6) }
 0x11c   : > { %865 = vst.msk [vmem:[%s2319_s3 + $0xd8] sm:$0xff] %vm837_vm0, %v655_v33  ;;  %v2006_v33 = vld [vmem:[%s3077_s1 + $0x20] ss:$0 sm:$0xff] }
 0x11d   : > { %1892 = vst.msk [vmem:[%s2319_s3 + $0x2f0] sm:$0xff] %vm837_vm0, %v2004_v31 }
 0x11e   : > { %1893 = vst.msk [vmem:[%s2319_s3 + $0x2f8] sm:$0xff] %vm837_vm0, %v2005_v32 }
 0x11f   : > { %1894 = vst.msk [vmem:[%s2319_s3 + $0x300] sm:$0xff] %vm837_vm0, %v2006_v33  ;;  %v1579_v33 = vld [vmem:[%s2319_s3 + $0x100] sm:$0xff] (%p2129_p6) }
 0x120   : > { %1524 = vst [vmem:[%s2805_s22 + $0x40] sm:$0xff] (%p2129_p6), %v1523_v5  ;;  %v1651_v5 = vld [vmem:[%s2319_s3 + $0x220] sm:$0xff] (%p2129_p6) }
 0x121   : > { %v725_v34 = vpop.permute.xlu2 %724  ;;  %1526 = vst [vmem:[%s2805_s22 + $0x50] sm:$0xff] (%p2129_p6), %v1525_v6  ;;  %v1653_v6 = vld [vmem:[%s2319_s3 + $0x228] sm:$0xff] (%p2129_p6) }
 0x122   : > { %v675_v35 = vpop.permute.xlu1 %674  ;;  %879 = vst.msk [vmem:[%s2319_s3 + $0x148] sm:$0xff] %vm837_vm0, %v725_v34  ;;  %v670_v36 = vpop.permute.xlu0 %669  ;;  %v2007_v34 = vld [vmem:[%s3077_s1 + $0x21] ss:$0 sm:$0xff] }
 0x123   : > { %869 = vst.msk [vmem:[%s2319_s3 + $0xf8] sm:$0xff] %vm837_vm0, %v675_v35  ;;  %v2008_v35 = vld [vmem:[%s3077_s1 + $0x22] ss:$0 sm:$0xff]  ;;  %v1569_v28 = vld [vmem:[%s2319_s3 + $0xd8] sm:$0xff] (%p2129_p6) }
 0x124   : > { %868 = vst.msk [vmem:[%s2319_s3 + $0xf0] sm:$0xff] %vm837_vm0, %v670_v36  ;;  %v2009_v36 = vld [vmem:[%s3077_s1 + $0x23] ss:$0 sm:$0xff] }
 0x125   : > { %1895 = vst.msk [vmem:[%s2319_s3 + $0x308] sm:$0xff] %vm837_vm0, %v2007_v34  ;;  %v1571_v29 = vld [vmem:[%s2319_s3 + $0xe0] sm:$0xff] (%p2129_p6) }
 0x126   : > { %1896 = vst.msk [vmem:[%s2319_s3 + $0x310] sm:$0xff] %vm837_vm0, %v2008_v35 }
 0x127   : > { %1897 = vst.msk [vmem:[%s2319_s3 + $0x318] sm:$0xff] %vm837_vm0, %v2009_v36  ;;  %v1585_v36 = vld [vmem:[%s2319_s3 + $0x118] sm:$0xff] (%p2129_p6) }
 0x128   : > { %1528 = vst [vmem:[%s2805_s22 + $0x60] sm:$0xff] (%p2129_p6), %v1527_v7  ;;  %v1655_v7 = vld [vmem:[%s2319_s3 + $0x230] sm:$0xff] (%p2129_p6) }
 0x129   : > { %v740_v37 = vpop.permute.xlu2 %739  ;;  %1530 = vst [vmem:[%s2805_s22 + $0x70] sm:$0xff] (%p2129_p6), %v1529_v8  ;;  %v1657_v8 = vld [vmem:[%s2319_s3 + $0x238] sm:$0xff] (%p2129_p6) }
 0x12a   : > { %v690_v38 = vpop.permute.xlu1 %689  ;;  %882 = vst.msk [vmem:[%s2319_s3 + $0x160] sm:$0xff] %vm837_vm0, %v740_v37  ;;  %v685_v39 = vpop.permute.xlu0 %684  ;;  %v2010_v37 = vld [vmem:[%s3077_s1 + $0x24] ss:$0 sm:$0xff]  ;;  %v1577_v32 = vld [vmem:[%s2319_s3 + $0xf8] sm:$0xff] (%p2129_p6) }
 0x12b   : > { %872 = vst.msk [vmem:[%s2319_s3 + $0x110] sm:$0xff] %vm837_vm0, %v690_v38  ;;  %v2011_v38 = vld [vmem:[%s3077_s1 + $0x25] ss:$0 sm:$0xff]  ;;  %v1575_v31 = vld [vmem:[%s2319_s3 + $0xf0] sm:$0xff] (%p2129_p6) }
 0x12c   : > { %871 = vst.msk [vmem:[%s2319_s3 + $0x108] sm:$0xff] %vm837_vm0, %v685_v39  ;;  %v2012_v39 = vld [vmem:[%s3077_s1 + $0x26] ss:$0 sm:$0xff] }
 0x12d   : > { %1898 = vst.msk [vmem:[%s2319_s3 + $0x320] sm:$0xff] %vm837_vm0, %v2010_v37 }
 0x12e   : > { %1899 = vst.msk [vmem:[%s2319_s3 + $0x328] sm:$0xff] %vm837_vm0, %v2011_v38 }
 0x12f   : > { %1900 = vst.msk [vmem:[%s2319_s3 + $0x330] sm:$0xff] %vm837_vm0, %v2012_v39  ;;  %v1591_v39 = vld [vmem:[%s2319_s3 + $0x130] sm:$0xff] (%p2129_p6) }
 0x130   : > { %1532 = vst [vmem:[%s2805_s22 + $0x80] sm:$0xff] (%p2129_p6), %v1531_v9  ;;  %v1659_v9 = vld [vmem:[%s2319_s3 + $0x240] sm:$0xff] (%p2129_p6) }
 0x131   : > { %v755_v40 = vpop.permute.xlu2 %754  ;;  %1536 = vst [vmem:[%s2805_s22 + $0xa0] sm:$0xff] (%p2129_p6), %v1535_v11  ;;  %v1663_v11 = vld [vmem:[%s2319_s3 + $0x250] sm:$0xff] (%p2129_p6) }
 0x132   : > { %v705_v41 = vpop.permute.xlu1 %704  ;;  %885 = vst.msk [vmem:[%s2319_s3 + $0x178] sm:$0xff] %vm837_vm0, %v755_v40  ;;  %v700_v42 = vpop.permute.xlu0 %699  ;;  %v2013_v40 = vld [vmem:[%s3077_s1 + $0x27] ss:$0 sm:$0xff]  ;;  %v1583_v35 = vld [vmem:[%s2319_s3 + $0x110] sm:$0xff] (%p2129_p6) }
 0x133   : > { %875 = vst.msk [vmem:[%s2319_s3 + $0x128] sm:$0xff] %vm837_vm0, %v705_v41  ;;  %v2014_v41 = vld [vmem:[%s3077_s1 + $0x28] ss:$0 sm:$0xff] }
 0x134   : > { %874 = vst.msk [vmem:[%s2319_s3 + $0x120] sm:$0xff] %vm837_vm0, %v700_v42  ;;  %v2015_v42 = vld [vmem:[%s3077_s1 + $0x29] ss:$0 sm:$0xff] }
 0x135   : > { %1901 = vst.msk [vmem:[%s2319_s3 + $0x338] sm:$0xff] %vm837_vm0, %v2013_v40  ;;  %v1581_v34 = vld [vmem:[%s2319_s3 + $0x108] sm:$0xff] (%p2129_p6) }
 0x136   : > { %1902 = vst.msk [vmem:[%s2319_s3 + $0x340] sm:$0xff] %vm837_vm0, %v2014_v41 }
 0x137   : > { %1903 = vst.msk [vmem:[%s2319_s3 + $0x348] sm:$0xff] %vm837_vm0, %v2015_v42  ;;  %v1597_v42 = vld [vmem:[%s2319_s3 + $0x148] sm:$0xff] (%p2129_p6) }
 0x138   : > { %1538 = vst [vmem:[%s2805_s22 + $0xb0] sm:$0xff] (%p2129_p6), %v1537_v12  ;;  %v1665_v12 = vld [vmem:[%s2319_s3 + $0x258] sm:$0xff] (%p2129_p6) }
 0x139   : > { %v770_v43 = vpop.permute.xlu2 %769  ;;  %1540 = vst [vmem:[%s2805_s22 + $0xc0] sm:$0xff] (%p2129_p6), %v1539_v13  ;;  %v1667_v13 = vld [vmem:[%s2319_s3 + $0x260] sm:$0xff] (%p2129_p6) }
 0x13a   : > { %v720_v44 = vpop.permute.xlu1 %719  ;;  %888 = vst.msk [vmem:[%s2319_s3 + $0x190] sm:$0xff] %vm837_vm0, %v770_v43  ;;  %v715_v45 = vpop.permute.xlu0 %714  ;;  %v2016_v43 = vld [vmem:[%s3077_s1 + $0x2a] ss:$0 sm:$0xff] }
 0x13b   : > { %878 = vst.msk [vmem:[%s2319_s3 + $0x140] sm:$0xff] %vm837_vm0, %v720_v44  ;;  %v2017_v44 = vld [vmem:[%s3077_s1 + $0x2b] ss:$0 sm:$0xff]  ;;  %v1587_v37 = vld [vmem:[%s2319_s3 + $0x120] sm:$0xff] (%p2129_p6) }
 0x13c   : > { %877 = vst.msk [vmem:[%s2319_s3 + $0x138] sm:$0xff] %vm837_vm0, %v715_v45  ;;  %v2018_v45 = vld [vmem:[%s3077_s1 + $0x2c] ss:$0 sm:$0xff] }
 0x13d   : > { %1904 = vst.msk [vmem:[%s2319_s3 + $0x350] sm:$0xff] %vm837_vm0, %v2016_v43  ;;  %v1589_v38 = vld [vmem:[%s2319_s3 + $0x128] sm:$0xff] (%p2129_p6) }
 0x13e   : > { %1905 = vst.msk [vmem:[%s2319_s3 + $0x358] sm:$0xff] %vm837_vm0, %v2017_v44 }
 0x13f   : > { %1906 = vst.msk [vmem:[%s2319_s3 + $0x360] sm:$0xff] %vm837_vm0, %v2018_v45  ;;  %v1603_v45 = vld [vmem:[%s2319_s3 + $0x160] sm:$0xff] (%p2129_p6) }
 0x140   : > { %1542 = vst [vmem:[%s2805_s22 + $0xd0] sm:$0xff] (%p2129_p6), %v1541_v14  ;;  %v1669_v14 = vld [vmem:[%s2319_s3 + $0x268] sm:$0xff] (%p2129_p6) }
 0x141   : > { %v785_v46 = vpop.permute.xlu2 %784  ;;  %1544 = vst [vmem:[%s2805_s22 + $0xe0] sm:$0xff] (%p2129_p6), %v1543_v15  ;;  %v1671_v15 = vld [vmem:[%s2319_s3 + $0x270] sm:$0xff] (%p2129_p6) }
 0x142   : > { %v735_v47 = vpop.permute.xlu1 %734  ;;  %891 = vst.msk [vmem:[%s2319_s3 + $0x1a8] sm:$0xff] %vm837_vm0, %v785_v46  ;;  %v730_v48 = vpop.permute.xlu0 %729  ;;  %v2019_v46 = vld [vmem:[%s3077_s1 + $0x2d] ss:$0 sm:$0xff]  ;;  %v1595_v41 = vld [vmem:[%s2319_s3 + $0x140] sm:$0xff] (%p2129_p6) }
 0x143   : > { %881 = vst.msk [vmem:[%s2319_s3 + $0x158] sm:$0xff] %vm837_vm0, %v735_v47  ;;  %v2020_v47 = vld [vmem:[%s3077_s1 + $0x2e] ss:$0 sm:$0xff]  ;;  %v1593_v40 = vld [vmem:[%s2319_s3 + $0x138] sm:$0xff] (%p2129_p6) }
 0x144   : > { %880 = vst.msk [vmem:[%s2319_s3 + $0x150] sm:$0xff] %vm837_vm0, %v730_v48  ;;  %v2021_v48 = vld [vmem:[%s3077_s1 + $0x2f] ss:$0 sm:$0xff] }
 0x145   : > { %1907 = vst.msk [vmem:[%s2319_s3 + $0x368] sm:$0xff] %vm837_vm0, %v2019_v46 }
 0x146   : > { %1908 = vst.msk [vmem:[%s2319_s3 + $0x370] sm:$0xff] %vm837_vm0, %v2020_v47 }
 0x147   : > { %1909 = vst.msk [vmem:[%s2319_s3 + $0x378] sm:$0xff] %vm837_vm0, %v2021_v48  ;;  %v1609_v48 = vld [vmem:[%s2319_s3 + $0x178] sm:$0xff] (%p2129_p6) }
 0x148   : > { %1546 = vst [vmem:[%s2805_s22 + $0xf0] sm:$0xff] (%p2129_p6), %v1545_v16  ;;  %v1673_v16 = vld [vmem:[%s2319_s3 + $0x278] sm:$0xff] (%p2129_p6) }
 0x149   : > { %v800_v49 = vpop.permute.xlu2 %799  ;;  %1548 = vst [vmem:[%s2805_s22 + $0x100] sm:$0xff] (%p2129_p6), %v1547_v17  ;;  %v1675_v17 = vld [vmem:[%s2319_s3 + $0x280] sm:$0xff] (%p2129_p6) }
 0x14a   : > { %v750_v50 = vpop.permute.xlu1 %749  ;;  %894 = vst.msk [vmem:[%s2319_s3 + $0x1c0] sm:$0xff] %vm837_vm0, %v800_v49  ;;  %v745_v51 = vpop.permute.xlu0 %744  ;;  %v2022_v49 = vld [vmem:[%s3077_s1 + $0x30] ss:$0 sm:$0xff]  ;;  %v1601_v44 = vld [vmem:[%s2319_s3 + $0x158] sm:$0xff] (%p2129_p6) }
 0x14b   : > { %884 = vst.msk [vmem:[%s2319_s3 + $0x170] sm:$0xff] %vm837_vm0, %v750_v50  ;;  %v2023_v50 = vld [vmem:[%s3077_s1 + $0x31] ss:$0 sm:$0xff] }
 0x14c   : > { %883 = vst.msk [vmem:[%s2319_s3 + $0x168] sm:$0xff] %vm837_vm0, %v745_v51  ;;  %v2024_v51 = vld [vmem:[%s3077_s1 + $0x32] ss:$0 sm:$0xff] }
 0x14d   : > { %1910 = vst.msk [vmem:[%s2319_s3 + $0x380] sm:$0xff] %vm837_vm0, %v2022_v49  ;;  %v1599_v43 = vld [vmem:[%s2319_s3 + $0x150] sm:$0xff] (%p2129_p6) }
 0x14e   : > { %1911 = vst.msk [vmem:[%s2319_s3 + $0x388] sm:$0xff] %vm837_vm0, %v2023_v50 }
 0x14f   : > { %1912 = vst.msk [vmem:[%s2319_s3 + $0x390] sm:$0xff] %vm837_vm0, %v2024_v51  ;;  %v1615_v51 = vld [vmem:[%s2319_s3 + $0x190] sm:$0xff] (%p2129_p6) }
 0x150   : > { %1550 = vst [vmem:[%s2805_s22 + $0x110] sm:$0xff] (%p2129_p6), %v1549_v18  ;;  %v1677_v18 = vld [vmem:[%s2319_s3 + $0x288] sm:$0xff] (%p2129_p6) }
 0x151   : > { %v815_v52 = vpop.permute.xlu2 %814  ;;  %1552 = vst [vmem:[%s2805_s22 + $0x120] sm:$0xff] (%p2129_p6), %v1551_v19  ;;  %v1679_v19 = vld [vmem:[%s2319_s3 + $0x290] sm:$0xff] (%p2129_p6) }
 0x152   : > { %v765_v53 = vpop.permute.xlu1 %764  ;;  %897 = vst.msk [vmem:[%s2319_s3 + $0x1d8] sm:$0xff] %vm837_vm0, %v815_v52  ;;  %v760_v54 = vpop.permute.xlu0 %759  ;;  %v2025_v52 = vld [vmem:[%s3077_s1 + $0x33] ss:$0 sm:$0xff] }
 0x153   : > { %887 = vst.msk [vmem:[%s2319_s3 + $0x188] sm:$0xff] %vm837_vm0, %v765_v53  ;;  %v2026_v53 = vld [vmem:[%s3077_s1 + $0x34] ss:$0 sm:$0xff]  ;;  %v1605_v46 = vld [vmem:[%s2319_s3 + $0x168] sm:$0xff] (%p2129_p6) }
 0x154   : > { %886 = vst.msk [vmem:[%s2319_s3 + $0x180] sm:$0xff] %vm837_vm0, %v760_v54  ;;  %v2027_v54 = vld [vmem:[%s3077_s1 + $0x35] ss:$0 sm:$0xff] }
 0x155   : > { %1913 = vst.msk [vmem:[%s2319_s3 + $0x398] sm:$0xff] %vm837_vm0, %v2025_v52  ;;  %v1607_v47 = vld [vmem:[%s2319_s3 + $0x170] sm:$0xff] (%p2129_p6) }
 0x156   : > { %1914 = vst.msk [vmem:[%s2319_s3 + $0x3a0] sm:$0xff] %vm837_vm0, %v2026_v53 }
 0x157   : > { %1915 = vst.msk [vmem:[%s2319_s3 + $0x3a8] sm:$0xff] %vm837_vm0, %v2027_v54  ;;  %v1621_v54 = vld [vmem:[%s2319_s3 + $0x1a8] sm:$0xff] (%p2129_p6) }
 0x158   : > { %1554 = vst [vmem:[%s2805_s22 + $0x130] sm:$0xff] (%p2129_p6), %v1553_v20  ;;  %v1681_v20 = vld [vmem:[%s2319_s3 + $0x298] sm:$0xff] (%p2129_p6) }
 0x159   : > { %v830_v55 = vpop.permute.xlu2 %829  ;;  %1556 = vst [vmem:[%s2805_s22 + $0x140] sm:$0xff] (%p2129_p6), %v1555_v21  ;;  %v1683_v21 = vld [vmem:[%s2319_s3 + $0x2a0] sm:$0xff] (%p2129_p6) }
 0x15a   : > { %v780_v56 = vpop.permute.xlu1 %779  ;;  %900 = vst.msk [vmem:[%s2319_s3 + $0x1f0] sm:$0xff] %vm837_vm0, %v830_v55  ;;  %v775_v57 = vpop.permute.xlu0 %774  ;;  %v2028_v55 = vld [vmem:[%s3077_s1 + $0x36] ss:$0 sm:$0xff]  ;;  %v1613_v50 = vld [vmem:[%s2319_s3 + $0x188] sm:$0xff] (%p2129_p6) }
 0x15b   : > { %890 = vst.msk [vmem:[%s2319_s3 + $0x1a0] sm:$0xff] %vm837_vm0, %v780_v56  ;;  %v2029_v56 = vld [vmem:[%s3077_s1 + $0x37] ss:$0 sm:$0xff]  ;;  %v1611_v49 = vld [vmem:[%s2319_s3 + $0x180] sm:$0xff] (%p2129_p6) }
 0x15c   : > { %889 = vst.msk [vmem:[%s2319_s3 + $0x198] sm:$0xff] %vm837_vm0, %v775_v57  ;;  %v2030_v57 = vld [vmem:[%s3077_s1 + $0x38] ss:$0 sm:$0xff] }
 0x15d   : > { %1916 = vst.msk [vmem:[%s2319_s3 + $0x3b0] sm:$0xff] %vm837_vm0, %v2028_v55 }
 0x15e   : > { %1917 = vst.msk [vmem:[%s2319_s3 + $0x3b8] sm:$0xff] %vm837_vm0, %v2029_v56 }
 0x15f   : > { %1918 = vst.msk [vmem:[%s2319_s3 + $0x3c0] sm:$0xff] %vm837_vm0, %v2030_v57  ;;  %v1627_v57 = vld [vmem:[%s2319_s3 + $0x1c0] sm:$0xff] (%p2129_p6) }
 0x160   : > { %1558 = vst [vmem:[%s2805_s22 + $0x150] sm:$0xff] (%p2129_p6), %v1557_v22  ;;  %v1685_v22 = vld [vmem:[%s2319_s3 + $0x2a8] sm:$0xff] (%p2129_p6) }
 0x161   : > { %1560 = vst [vmem:[%s2805_s22 + $0x160] sm:$0xff] (%p2129_p6), %v1559_v23  ;;  %v1639_v63 = vld [vmem:[%s2319_s3 + $0x1f0] sm:$0xff] (%p2129_p6) }
 0x162   : > { %v795_v58 = vpop.permute.xlu1 %794  ;;  %v790_v59 = vpop.permute.xlu0 %789  ;;  %1562 = vst [vmem:[%s2805_s22 + $0x170] sm:$0xff] (%p2129_p6), %v1561_v24  ;;  %v1619_v53 = vld [vmem:[%s2319_s3 + $0x1a0] sm:$0xff] (%p2129_p6)  ;;  %v1687_v23 = vld [vmem:[%s2319_s3 + $0x2b0] sm:$0xff] (%p2129_p6)  ;;  %v1689_v24 = vld [vmem:[%s2319_s3 + $0x2b8] sm:$0xff] (%p2129_p6) }
 0x163   : > { %893 = vst.msk [vmem:[%s2319_s3 + $0x1b8] sm:$0xff] %vm837_vm0, %v795_v58  ;;  %v2031_v58 = vld [vmem:[%s3077_s1 + $0x39] ss:$0 sm:$0xff] }
 0x164   : > { %892 = vst.msk [vmem:[%s2319_s3 + $0x1b0] sm:$0xff] %vm837_vm0, %v790_v59  ;;  %v2032_v59 = vld [vmem:[%s3077_s1 + $0x3a] ss:$0 sm:$0xff] }
 0x165   : > { %1919 = vst.msk [vmem:[%s2319_s3 + $0x3c8] sm:$0xff] %vm837_vm0, %v2031_v58  ;;  %v1617_v52 = vld [vmem:[%s2319_s3 + $0x198] sm:$0xff] (%p2129_p6) }
 0x166   : > { %1920 = vst.msk [vmem:[%s2319_s3 + $0x3d0] sm:$0xff] %vm837_vm0, %v2032_v59 }
 0x167   : > { %1564 = vst [vmem:[%s2805_s22 + $0x180] sm:$0xff] (%p2129_p6), %v1563_v25  ;;  %v1691_v25 = vld [vmem:[%s2319_s3 + $0x2c0] sm:$0xff] (%p2129_p6) }
 0x168   : > { %1566 = vst [vmem:[%s2805_s22 + $0x190] sm:$0xff] (%p2129_p6), %v1565_v26  ;;  %v1693_v26 = vld [vmem:[%s2319_s3 + $0x2c8] sm:$0xff] (%p2129_p6) }
 0x169   : > { %1568 = vst [vmem:[%s2805_s22 + $0x1a0] sm:$0xff] (%p2129_p6), %v1567_v27  ;;  %v1695_v27 = vld [vmem:[%s2319_s3 + $0x2d0] sm:$0xff] (%p2129_p6) }
 0x16a   : > { %v810_v60 = vpop.permute.xlu1 %809  ;;  %v805_v61 = vpop.permute.xlu0 %804  ;;  %1570 = vst [vmem:[%s2805_s22 + $0x1b0] sm:$0xff] (%p2129_p6), %v1569_v28  ;;  %v1625_v56 = vld [vmem:[%s2319_s3 + $0x1b8] sm:$0xff] (%p2129_p6) }
 0x16b   : > { %896 = vst.msk [vmem:[%s2319_s3 + $0x1d0] sm:$0xff] %vm837_vm0, %v810_v60  ;;  %v2033_v60 = vld [vmem:[%s3077_s1 + $0x3b] ss:$0 sm:$0xff]  ;;  %v1623_v55 = vld [vmem:[%s2319_s3 + $0x1b0] sm:$0xff] (%p2129_p6) }
 0x16c   : > { %895 = vst.msk [vmem:[%s2319_s3 + $0x1c8] sm:$0xff] %vm837_vm0, %v805_v61  ;;  %v2034_v61 = vld [vmem:[%s3077_s1 + $0x3c] ss:$0 sm:$0xff] }
 0x16d   : > { %1921 = vst.msk [vmem:[%s2319_s3 + $0x3d8] sm:$0xff] %vm837_vm0, %v2033_v60  ;;  %v1633_v60 = vld [vmem:[%s2319_s3 + $0x1d8] sm:$0xff] (%p2129_p6) }
 0x16e   : > { %1922 = vst.msk [vmem:[%s2319_s3 + $0x3e0] sm:$0xff] %vm837_vm0, %v2034_v61  ;;  %v1697_v28 = vld [vmem:[%s2319_s3 + $0x2d8] sm:$0xff] (%p2129_p6) }
 0x16f   : > { %1572 = vst [vmem:[%s2805_s22 + $0x1c0] sm:$0xff] (%p2129_p6), %v1571_v29  ;;  %v1699_v29 = vld [vmem:[%s2319_s3 + $0x2e0] sm:$0xff] (%p2129_p6) }
 0x170   : > { %1574 = vst [vmem:[%s2805_s22 + $0x1d0] sm:$0xff] (%p2129_p6), %v1573_v30  ;;  %v1701_v30 = vld [vmem:[%s2319_s3 + $0x2e8] sm:$0xff] (%p2129_p6) }
 0x171   : > { %1576 = vst [vmem:[%s2805_s22 + $0x1e0] sm:$0xff] (%p2129_p6), %v1575_v31  ;;  %v1703_v31 = vld [vmem:[%s2319_s3 + $0x2f0] sm:$0xff] (%p2129_p6) }
 0x172   : > { %v825_v0 = vpop.permute.xlu1 %824  ;;  %v820_v2 = vpop.permute.xlu0 %819  ;;  %1578 = vst [vmem:[%s2805_s22 + $0x1f0] sm:$0xff] (%p2129_p6), %v1577_v32  ;;  %v1631_v59 = vld [vmem:[%s2319_s3 + $0x1d0] sm:$0xff] (%p2129_p6)  ;;  %v1705_v32 = vld [vmem:[%s2319_s3 + $0x2f8] sm:$0xff] (%p2129_p6) }
 0x173   : > { %899 = vst.msk [vmem:[%s2319_s3 + $0x1e8] sm:$0xff] %vm837_vm0, %v825_v0  ;;  %v2037_v0 = vld [vmem:[%s3077_s1 + $0x3f] ss:$0 sm:$0xff]  ;;  %v1629_v58 = vld [vmem:[%s2319_s3 + $0x1c8] sm:$0xff] (%p2129_p6) }
 0x174   : > { %898 = vst.msk [vmem:[%s2319_s3 + $0x1e0] sm:$0xff] %vm837_vm0, %v820_v2  ;;  %v1517_v2 = vld [vmem:[%s2319_s3 + $0x8] sm:$0xff] (%p2129_p6) }
 0x175   : > { %1925 = vst.msk [vmem:[%s2319_s3 + $0x3f8] sm:$0xff] %vm837_vm0, %v2037_v0 }
 0x176   : > { %1518 = vst [vmem:[%s2805_s22 + $0x10] sm:$0xff] (%p2129_p6), %v1517_v2  ;;  %v1645_v2 = vld [vmem:[%s2319_s3 + $0x208] sm:$0xff] (%p2129_p6) }
 0x177   : > { %1229 = sbr.rel (!%p2129_p6) target bundleno = 473 (0x1d9), region = 70  ;;  %1580 = vst [vmem:[%s2805_s22 + $0x200] sm:$0xff] (%p2129_p6), %v1579_v33  ;;  %v1707_v33 = vld [vmem:[%s2319_s3 + $0x300] sm:$0xff] (%p2129_p6) }
 0x178   : > { %1582 = vst [vmem:[%s2805_s22 + $0x210] sm:$0xff] (%p2129_p6), %v1581_v34  ;;  %v1709_v34 = vld [vmem:[%s2319_s3 + $0x308] sm:$0xff] (%p2129_p6) }
 0x179   : > { %1584 = vst [vmem:[%s2805_s22 + $0x220] sm:$0xff] (%p2129_p6), %v1583_v35  ;;  %v1711_v35 = vld [vmem:[%s2319_s3 + $0x310] sm:$0xff] (%p2129_p6) }
 0x17a   : > { %v835_v10 = vpop.permute.xlu0 %834  ;;  %1586 = vst [vmem:[%s2805_s22 + $0x230] sm:$0xff] (%p2129_p6), %v1585_v36  ;;  %v1637_v62 = vld [vmem:[%s2319_s3 + $0x1e8] sm:$0xff] (%p2129_p6)  ;;  %v1713_v36 = vld [vmem:[%s2319_s3 + $0x318] sm:$0xff] (%p2129_p6) }
 0x17b   : > { %901 = vst.msk [vmem:[%s2319_s3 + $0x1f8] sm:$0xff] %vm837_vm0, %v835_v10  ;;  %v1533_v10 = vld [vmem:[%s2319_s3 + $0x48] sm:$0xff] (%p2129_p6)  ;;  %v1635_v61 = vld [vmem:[%s2319_s3 + $0x1e0] sm:$0xff] (%p2129_p6) }
 0x17c   : > { %1534 = vst [vmem:[%s2805_s22 + $0x90] sm:$0xff] %v1533_v10  ;;  %v1661_v10 = vld [vmem:[%s2319_s3 + $0x248] sm:$0xff] }
 0x17d   : > { %1588 = vst [vmem:[%s2805_s22 + $0x240] sm:$0xff] %v1587_v37  ;;  %v1715_v37 = vld [vmem:[%s2319_s3 + $0x320] sm:$0xff] }
 0x17e   : > { %1590 = vst [vmem:[%s2805_s22 + $0x250] sm:$0xff] %v1589_v38  ;;  %v1717_v38 = vld [vmem:[%s2319_s3 + $0x328] sm:$0xff] }
 0x17f   : > { %1592 = vst [vmem:[%s2805_s22 + $0x260] sm:$0xff] %v1591_v39  ;;  %v1719_v39 = vld [vmem:[%s2319_s3 + $0x330] sm:$0xff] }
 0x180   : > { %1594 = vst [vmem:[%s2805_s22 + $0x270] sm:$0xff] %v1593_v40  ;;  %v1721_v40 = vld [vmem:[%s2319_s3 + $0x338] sm:$0xff] }
 0x181   : > { %1596 = vst [vmem:[%s2805_s22 + $0x280] sm:$0xff] %v1595_v41  ;;  %v1723_v41 = vld [vmem:[%s2319_s3 + $0x340] sm:$0xff] }
 0x182   : > { %1598 = vst [vmem:[%s2805_s22 + $0x290] sm:$0xff] %v1597_v42  ;;  %v1641_v0 = vld [vmem:[%s2319_s3 + $0x1f8] sm:$0xff]  ;;  %v1725_v42 = vld [vmem:[%s2319_s3 + $0x348] sm:$0xff] }
 0x183   : > { %1600 = vst [vmem:[%s2805_s22 + $0x2a0] sm:$0xff] %v1599_v43  ;;  %v1727_v43 = vld [vmem:[%s2319_s3 + $0x350] sm:$0xff] }
 0x184   : > { %1602 = vst [vmem:[%s2805_s22 + $0x2b0] sm:$0xff] %v1601_v44  ;;  %v1729_v44 = vld [vmem:[%s2319_s3 + $0x358] sm:$0xff] }
 0x185   : > { %1604 = vst [vmem:[%s2805_s22 + $0x2c0] sm:$0xff] %v1603_v45  ;;  %v1731_v45 = vld [vmem:[%s2319_s3 + $0x360] sm:$0xff] }
 0x186   : > { %1606 = vst [vmem:[%s2805_s22 + $0x2d0] sm:$0xff] %v1605_v46  ;;  %v1733_v46 = vld [vmem:[%s2319_s3 + $0x368] sm:$0xff] }
 0x187   : > { %1608 = vst [vmem:[%s2805_s22 + $0x2e0] sm:$0xff] %v1607_v47  ;;  %v1735_v47 = vld [vmem:[%s2319_s3 + $0x370] sm:$0xff] }
 0x188   : > { %1610 = vst [vmem:[%s2805_s22 + $0x2f0] sm:$0xff] %v1609_v48  ;;  %v1737_v48 = vld [vmem:[%s2319_s3 + $0x378] sm:$0xff] }
 0x189   : > { %1612 = vst [vmem:[%s2805_s22 + $0x300] sm:$0xff] %v1611_v49  ;;  %v1739_v49 = vld [vmem:[%s2319_s3 + $0x380] sm:$0xff] }
 0x18a   : > { %1614 = vst [vmem:[%s2805_s22 + $0x310] sm:$0xff] %v1613_v50  ;;  %v1741_v50 = vld [vmem:[%s2319_s3 + $0x388] sm:$0xff] }
 0x18b   : > { %1616 = vst [vmem:[%s2805_s22 + $0x320] sm:$0xff] %v1615_v51  ;;  %v1743_v51 = vld [vmem:[%s2319_s3 + $0x390] sm:$0xff] }
 0x18c   : > { %1618 = vst [vmem:[%s2805_s22 + $0x330] sm:$0xff] %v1617_v52  ;;  %v1745_v52 = vld [vmem:[%s2319_s3 + $0x398] sm:$0xff] }
 0x18d   : > { %1620 = vst [vmem:[%s2805_s22 + $0x340] sm:$0xff] %v1619_v53  ;;  %v1747_v53 = vld [vmem:[%s2319_s3 + $0x3a0] sm:$0xff] }
 0x18e   : > { %1622 = vst [vmem:[%s2805_s22 + $0x350] sm:$0xff] %v1621_v54  ;;  %v1749_v54 = vld [vmem:[%s2319_s3 + $0x3a8] sm:$0xff] }
 0x18f   : > { %1624 = vst [vmem:[%s2805_s22 + $0x360] sm:$0xff] %v1623_v55  ;;  %v1751_v55 = vld [vmem:[%s2319_s3 + $0x3b0] sm:$0xff] }
 0x190   : > { %1626 = vst [vmem:[%s2805_s22 + $0x370] sm:$0xff] %v1625_v56  ;;  %v1753_v56 = vld [vmem:[%s2319_s3 + $0x3b8] sm:$0xff] }
 0x191   : > { %1628 = vst [vmem:[%s2805_s22 + $0x380] sm:$0xff] %v1627_v57  ;;  %v1755_v57 = vld [vmem:[%s2319_s3 + $0x3c0] sm:$0xff] }
 0x192   : > { %1630 = vst [vmem:[%s2805_s22 + $0x390] sm:$0xff] %v1629_v58  ;;  %v1757_v58 = vld [vmem:[%s2319_s3 + $0x3c8] sm:$0xff] }
 0x193   : > { %1632 = vst [vmem:[%s2805_s22 + $0x3a0] sm:$0xff] %v1631_v59  ;;  %v1759_v59 = vld [vmem:[%s2319_s3 + $0x3d0] sm:$0xff] }
 0x194   : > { %1634 = vst [vmem:[%s2805_s22 + $0x3b0] sm:$0xff] %v1633_v60  ;;  %v1761_v60 = vld [vmem:[%s2319_s3 + $0x3d8] sm:$0xff] }
 0x195   : > { %1636 = vst [vmem:[%s2805_s22 + $0x3c0] sm:$0xff] %v1635_v61  ;;  %v1763_v61 = vld [vmem:[%s2319_s3 + $0x3e0] sm:$0xff] }
 0x196   : > { %1638 = vst [vmem:[%s2805_s22 + $0x3d0] sm:$0xff] %v1637_v62  ;;  %v1765_v62 = vld [vmem:[%s2319_s3 + $0x3e8] sm:$0xff] }
 0x197   : > { %1640 = vst [vmem:[%s2805_s22 + $0x3e0] sm:$0xff] %v1639_v63  ;;  %v1767_v63 = vld [vmem:[%s2319_s3 + $0x3f0] sm:$0xff] }
 0x198   : > { %1642 = vst [vmem:[%s2805_s22 + $0x3f0] sm:$0xff] %v1641_v0  ;;  %v1769_v0 = vld [vmem:[%s2319_s3 + $0x3f8] sm:$0xff] }
 0x199   : > { %1644 = vst [vmem:[%s2805_s22 + $0x400] sm:$0xff] %v1643_v1 }
 0x19a   : > { %1646 = vst [vmem:[%s2805_s22 + $0x410] sm:$0xff] %v1645_v2 }
 0x19b   : > { %1648 = vst [vmem:[%s2805_s22 + $0x420] sm:$0xff] %v1647_v3 }
 0x19c   : > { %1650 = vst [vmem:[%s2805_s22 + $0x430] sm:$0xff] %v1649_v4 }
 0x19d   : > { %1652 = vst [vmem:[%s2805_s22 + $0x440] sm:$0xff] %v1651_v5 }
 0x19e   : > { %1654 = vst [vmem:[%s2805_s22 + $0x450] sm:$0xff] %v1653_v6 }
 0x19f   : > { %1656 = vst [vmem:[%s2805_s22 + $0x460] sm:$0xff] %v1655_v7 }
 0x1a0   : > { %1658 = vst [vmem:[%s2805_s22 + $0x470] sm:$0xff] %v1657_v8 }
 0x1a1   : > { %1660 = vst [vmem:[%s2805_s22 + $0x480] sm:$0xff] %v1659_v9 }
 0x1a2   : > { %1662 = vst [vmem:[%s2805_s22 + $0x490] sm:$0xff] %v1661_v10 }
 0x1a3   : > { %1664 = vst [vmem:[%s2805_s22 + $0x4a0] sm:$0xff] %v1663_v11 }
 0x1a4   : > { %1666 = vst [vmem:[%s2805_s22 + $0x4b0] sm:$0xff] %v1665_v12 }
 0x1a5   : > { %1668 = vst [vmem:[%s2805_s22 + $0x4c0] sm:$0xff] %v1667_v13 }
 0x1a6   : > { %1670 = vst [vmem:[%s2805_s22 + $0x4d0] sm:$0xff] %v1669_v14 }
 0x1a7   : > { %1672 = vst [vmem:[%s2805_s22 + $0x4e0] sm:$0xff] %v1671_v15 }
 0x1a8   : > { %1674 = vst [vmem:[%s2805_s22 + $0x4f0] sm:$0xff] %v1673_v16 }
 0x1a9   : > { %1676 = vst [vmem:[%s2805_s22 + $0x500] sm:$0xff] %v1675_v17 }
 0x1aa   : > { %1678 = vst [vmem:[%s2805_s22 + $0x510] sm:$0xff] %v1677_v18 }
 0x1ab   : > { %1680 = vst [vmem:[%s2805_s22 + $0x520] sm:$0xff] %v1679_v19 }
 0x1ac   : > { %1682 = vst [vmem:[%s2805_s22 + $0x530] sm:$0xff] %v1681_v20 }
 0x1ad   : > { %1684 = vst [vmem:[%s2805_s22 + $0x540] sm:$0xff] %v1683_v21 }
 0x1ae   : > { %1686 = vst [vmem:[%s2805_s22 + $0x550] sm:$0xff] %v1685_v22 }
 0x1af   : > { %1688 = vst [vmem:[%s2805_s22 + $0x560] sm:$0xff] %v1687_v23 }
 0x1b0   : > { %1690 = vst [vmem:[%s2805_s22 + $0x570] sm:$0xff] %v1689_v24 }
 0x1b1   : > { %1692 = vst [vmem:[%s2805_s22 + $0x580] sm:$0xff] %v1691_v25 }
 0x1b2   : > { %1694 = vst [vmem:[%s2805_s22 + $0x590] sm:$0xff] %v1693_v26 }
 0x1b3   : > { %1696 = vst [vmem:[%s2805_s22 + $0x5a0] sm:$0xff] %v1695_v27 }
 0x1b4   : > { %1698 = vst [vmem:[%s2805_s22 + $0x5b0] sm:$0xff] %v1697_v28 }
 0x1b5   : > { %1700 = vst [vmem:[%s2805_s22 + $0x5c0] sm:$0xff] %v1699_v29 }
 0x1b6   : > { %1702 = vst [vmem:[%s2805_s22 + $0x5d0] sm:$0xff] %v1701_v30 }
 0x1b7   : > { %1704 = vst [vmem:[%s2805_s22 + $0x5e0] sm:$0xff] %v1703_v31 }
 0x1b8   : > { %1706 = vst [vmem:[%s2805_s22 + $0x5f0] sm:$0xff] %v1705_v32 }
 0x1b9   : > { %1708 = vst [vmem:[%s2805_s22 + $0x600] sm:$0xff] %v1707_v33 }
 0x1ba   : > { %1710 = vst [vmem:[%s2805_s22 + $0x610] sm:$0xff] %v1709_v34 }
 0x1bb   : > { %1712 = vst [vmem:[%s2805_s22 + $0x620] sm:$0xff] %v1711_v35 }
 0x1bc   : > { %1714 = vst [vmem:[%s2805_s22 + $0x630] sm:$0xff] %v1713_v36 }
 0x1bd   : > { %1716 = vst [vmem:[%s2805_s22 + $0x640] sm:$0xff] %v1715_v37 }
 0x1be   : > { %1718 = vst [vmem:[%s2805_s22 + $0x650] sm:$0xff] %v1717_v38 }
 0x1bf   : > { %1720 = vst [vmem:[%s2805_s22 + $0x660] sm:$0xff] %v1719_v39 }
 0x1c0   : > { %1722 = vst [vmem:[%s2805_s22 + $0x670] sm:$0xff] %v1721_v40 }
 0x1c1   : > { %1724 = vst [vmem:[%s2805_s22 + $0x680] sm:$0xff] %v1723_v41 }
 0x1c2   : > { %1726 = vst [vmem:[%s2805_s22 + $0x690] sm:$0xff] %v1725_v42 }
 0x1c3   : > { %1728 = vst [vmem:[%s2805_s22 + $0x6a0] sm:$0xff] %v1727_v43 }
 0x1c4   : > { %1730 = vst [vmem:[%s2805_s22 + $0x6b0] sm:$0xff] %v1729_v44 }
 0x1c5   : > { %1732 = vst [vmem:[%s2805_s22 + $0x6c0] sm:$0xff] %v1731_v45 }
 0x1c6   : > { %1734 = vst [vmem:[%s2805_s22 + $0x6d0] sm:$0xff] %v1733_v46 }
 0x1c7   : > { %1736 = vst [vmem:[%s2805_s22 + $0x6e0] sm:$0xff] %v1735_v47 }
 0x1c8   : > { %1738 = vst [vmem:[%s2805_s22 + $0x6f0] sm:$0xff] %v1737_v48 }
 0x1c9   : > { %1740 = vst [vmem:[%s2805_s22 + $0x700] sm:$0xff] %v1739_v49 }
 0x1ca   : > { %1742 = vst [vmem:[%s2805_s22 + $0x710] sm:$0xff] %v1741_v50 }
 0x1cb   : > { %1744 = vst [vmem:[%s2805_s22 + $0x720] sm:$0xff] %v1743_v51 }
 0x1cc   : > { %1746 = vst [vmem:[%s2805_s22 + $0x730] sm:$0xff] %v1745_v52 }
 0x1cd   : > { %1748 = vst [vmem:[%s2805_s22 + $0x740] sm:$0xff] %v1747_v53 }
 0x1ce   : > { %1750 = vst [vmem:[%s2805_s22 + $0x750] sm:$0xff] %v1749_v54 }
 0x1cf   : > { %1752 = vst [vmem:[%s2805_s22 + $0x760] sm:$0xff] %v1751_v55 }
 0x1d0   : > { %1754 = vst [vmem:[%s2805_s22 + $0x770] sm:$0xff] %v1753_v56 }
 0x1d1   : > { %1756 = vst [vmem:[%s2805_s22 + $0x780] sm:$0xff] %v1755_v57 }
 0x1d2   : > { %1758 = vst [vmem:[%s2805_s22 + $0x790] sm:$0xff] %v1757_v58 }
 0x1d3   : > { %1760 = vst [vmem:[%s2805_s22 + $0x7a0] sm:$0xff] %v1759_v59 }
 0x1d4   : > { %1762 = vst [vmem:[%s2805_s22 + $0x7b0] sm:$0xff] %v1761_v60 }
 0x1d5   : > { %1764 = vst [vmem:[%s2805_s22 + $0x7c0] sm:$0xff] %v1763_v61 }
 0x1d6   : > { %1766 = vst [vmem:[%s2805_s22 + $0x7d0] sm:$0xff] %v1765_v62 }
 0x1d7   : > { %1768 = vst [vmem:[%s2805_s22 + $0x7e0] sm:$0xff] %v1767_v63 }
 0x1d8   : > { %1770 = vst [vmem:[%s2805_s22 + $0x7f0] sm:$0xff] %v1769_v0 }
 0x1d9 PF: > { %s12_s13 = sadd.s32 1, %s2076_s13   ;;  %s3080_s9 = smov %s2064_s10 }
 0x1da   : > { %p9_p11 = scmp.ge.s32.totalorder %s12_s13, 4   ;;  %s3081_s10 = smov %s2134_s19 }
 0x1db   : > { %s3082_s11 = smov %s2072_s12  ;;  %s3083_s12 = smov %s3085_s14 }
 0x1dc   :  { %11 = sbr.rel (!%p9_p11) target bundleno = 3 (0x3), region = 143 }

</bundles_post_ra>
